<compile_context>
chip_gen: v7x
topology: tpu7x:2x2x1
jax: 0.10.0
libtpu: 0.0.40
codegen_flags: <defaults>
</compile_context>

<pallas_src>
import functools

import jax
import jax.numpy as jnp
from jax import lax
from jax.experimental import pallas as pl
from jax.experimental.pallas import tpu as pltpu


_VMEM_LIMIT = 32 * 1024 * 1024   # fits v7x (64 MiB physical) with headroom; fine on v5e/v6e


def _round_up(x, m):
    return (x + m - 1) // m * m


def _pad2d(a, rows, cols):
    r, c = a.shape
    if r == rows and c == cols:
        return a
    return jnp.pad(a, ((0, rows - r), (0, cols - c)))


# --------------------------- fused 3x3 conv kernel ---------------------------
# Grid: (N,).  Each step holds one padded image (1, H+2, W+2, Cinp) in VMEM and the
# full tap-major weight (9, Cinp, Coutp) resident; the 9 taps are shifted slices of
# the VMEM image, accumulated in f32.

def _conv3x3_kernel(*refs, has_prologue, has_out_bias, apply_out_relu,
                    has_residual, has_shortcut):
    it = iter(refs)
    x_ref = next(it)
    w_ref = next(it)
    scale_in_ref = bias_in_ref = out_bias_ref = res_ref = scx_ref = scw_ref = None
    if has_prologue:
        scale_in_ref = next(it)
        bias_in_ref = next(it)
    if has_out_bias:
        out_bias_ref = next(it)
    if has_residual:
        res_ref = next(it)
    if has_shortcut:
        scx_ref = next(it)
        scw_ref = next(it)
    o_ref = next(it)

    _, hp, wp, cin = x_ref.shape
    _, ho, wo, cout = o_ref.shape

    x = x_ref[0]                                           # (hp, wp, cin)
    if has_prologue:
        # bn1 + relu fused on the raw input; re-zero the spatial zero-pad border.
        act = jnp.maximum(x.astype(jnp.float32) * scale_in_ref[...]
                          + bias_in_ref[...], 0.0)
        hh = lax.broadcasted_iota(jnp.int32, act.shape, 0)
        ww = lax.broadcasted_iota(jnp.int32, act.shape, 1)
        interior = (hh >= 1) & (hh <= ho) & (ww >= 1) & (ww <= wo)
        act = jnp.where(interior, act, 0.0).astype(jnp.bfloat16)
    else:
        act = x                                            # already activated, bf16

    acc = jnp.zeros((ho * wo, cout), jnp.float32)
    for t in range(9):                                     # implicit im2col: 9 taps
        dy, dx = t // 3, t % 3
        a = act[dy:dy + ho, dx:dx + wo, :].reshape(ho * wo, cin)
        acc = acc + jnp.dot(a, w_ref[t], preferred_element_type=jnp.float32)

    if has_shortcut:                                       # fused 1x1 shortcut conv
        scx = scx_ref[0].reshape(ho * wo, scx_ref.shape[3])
        acc = acc + jnp.dot(scx, scw_ref[...], preferred_element_type=jnp.float32)
    if has_out_bias:                                       # bn2 bias (scale folded in W)
        acc = acc + out_bias_ref[...]
    if apply_out_relu:
        acc = jnp.maximum(acc, 0.0)
    if has_residual:                                       # identity shortcut (f32)
        acc = acc + res_ref[0].reshape(ho * wo, cout)
    o_ref[0] = acc.reshape(ho, wo, cout).astype(o_ref.dtype)


def pallas_conv3x3(x_pad, w9, *, in_scale=None, in_bias=None, out_bias=None,
                   apply_relu=False, residual=None, shortcut_x=None,
                   shortcut_w=None, out_dtype=jnp.float32):
    """Fused stride-1 3x3 conv with implicit im2col.

    x_pad:      (N, H+2, W+2, Cinp)  spatially zero-padded input, channels padded to 128x
    w9:         (9, Cinp, Coutp)     tap-major weights (bn scale may be pre-folded)
    in_scale/in_bias: (1, 1, Cinp)   optional bn+relu prologue on the input
    out_bias:   (1, Coutp)           optional bias (+relu) epilogue
    residual:   (N, H, W, Coutp) f32 optional identity shortcut added in the epilogue
    shortcut_x: (N, H, W, Cscp) bf16 + shortcut_w (Cscp, Coutp): fused 1x1 shortcut conv
    """
    N, hp, wp, cinp = x_pad.shape
    ho, wo = hp - 2, wp - 2
    coutp = w9.shape[2]

    has_prologue = in_scale is not None
    has_out_bias = out_bias is not None
    has_residual = residual is not None
    has_shortcut = shortcut_x is not None

    inputs = [x_pad, w9.astype(jnp.bfloat16)]
    in_specs = [
        pl.BlockSpec((1, hp, wp, cinp), lambda n: (n, 0, 0, 0)),
        pl.BlockSpec((9, cinp, coutp), lambda n: (0, 0, 0)),    # weights VMEM-resident
    ]
    if has_prologue:
        inputs += [in_scale.astype(jnp.float32), in_bias.astype(jnp.float32)]
        in_specs += [pl.BlockSpec((1, 1, cinp), lambda n: (0, 0, 0)),
                     pl.BlockSpec((1, 1, cinp), lambda n: (0, 0, 0))]
    if has_out_bias:
        inputs.append(out_bias.astype(jnp.float32))
        in_specs.append(pl.BlockSpec((1, coutp), lambda n: (0, 0)))
    if has_residual:
        inputs.append(residual.astype(jnp.float32))
        in_specs.append(pl.BlockSpec((1, ho, wo, coutp), lambda n: (n, 0, 0, 0)))
    if has_shortcut:
        cscp = shortcut_x.shape[3]
        inputs += [shortcut_x.astype(jnp.bfloat16), shortcut_w.astype(jnp.bfloat16)]
        in_specs += [pl.BlockSpec((1, ho, wo, cscp), lambda n: (n, 0, 0, 0)),
                     pl.BlockSpec((cscp, coutp), lambda n: (0, 0))]

    kernel = functools.partial(
        _conv3x3_kernel, has_prologue=has_prologue, has_out_bias=has_out_bias,
        apply_out_relu=apply_relu, has_residual=has_residual,
        has_shortcut=has_shortcut)

    return pl.pallas_call(
        kernel,
        out_shape=jax.ShapeDtypeStruct((N, ho, wo, coutp), out_dtype),
        grid_spec=pltpu.PrefetchScalarGridSpec(
            num_scalar_prefetch=0,
            grid=(N,),
            in_specs=in_specs,
            out_specs=pl.BlockSpec((1, ho, wo, coutp), lambda n: (n, 0, 0, 0)),
        ),
        compiler_params=pltpu.CompilerParams(
            dimension_semantics=("parallel",),
            vmem_limit_bytes=_VMEM_LIMIT),
    )(*inputs)


# ------------------ elementwise bn+relu (transition blocks only) -------------

def _bn_relu_kernel(x_ref, scale_ref, bias_ref, o_ref):
    o_ref[...] = jnp.maximum(x_ref[...] * scale_ref[...] + bias_ref[...],
                             0.0).astype(o_ref.dtype)


def pallas_bn_relu(x2d, scale, bias, out_dtype=jnp.bfloat16):
    """relu(x*scale+bias), rows tiled; >= 2 parallel blocks for megacore."""
    M, C = x2d.shape
    Cp = _round_up(C, 128)
    tm = min(1024, max(8, _round_up(-(-M // 2), 8)))
    Mp = _round_up(M, tm)
    x_p = _pad2d(x2d.astype(jnp.float32), Mp, Cp)
    s_p = _pad2d(scale.reshape(1, C).astype(jnp.float32), 1, Cp)
    b_p = _pad2d(bias.reshape(1, C).astype(jnp.float32), 1, Cp)
    out = pl.pallas_call(
        _bn_relu_kernel,
        out_shape=jax.ShapeDtypeStruct((Mp, Cp), out_dtype),
        grid_spec=pltpu.PrefetchScalarGridSpec(
            num_scalar_prefetch=0,
            grid=(Mp // tm,),
            in_specs=[pl.BlockSpec((tm, Cp), lambda i: (i, 0)),
                      pl.BlockSpec((1, Cp), lambda i: (0, 0)),
                      pl.BlockSpec((1, Cp), lambda i: (0, 0))],
            out_specs=pl.BlockSpec((tm, Cp), lambda i: (i, 0)),
        ),
        compiler_params=pltpu.CompilerParams(
            dimension_semantics=("parallel",),
            vmem_limit_bytes=_VMEM_LIMIT),
    )(x_p, s_p, b_p)
    return out[:M, :C]


# -------------- im2col GEMM (only for the stride-2 conv1 path) ---------------

def _gemm_bias_relu_kernel(a_ref, b_ref, bias_ref, o_ref):
    acc = jnp.dot(a_ref[...], b_ref[...], preferred_element_type=jnp.float32)
    o_ref[...] = jnp.maximum(acc + bias_ref[...], 0.0).astype(o_ref.dtype)


def pallas_gemm_bias_relu(a, b, bias, out_dtype=jnp.bfloat16):
    """relu(a @ b + bias).  Full-K, full-N per step (weights VMEM-resident across the
    M grid); padded N columns are exact zeros and kept for the downstream conv."""
    M, K = a.shape
    _, Nn = b.shape
    Kp, Np = _round_up(K, 128), _round_up(Nn, 128)
    tm = min(512, max(8, _round_up(-(-M // 2), 8)))       # >= 2 parallel blocks
    Mp = _round_up(M, tm)
    a_p = _pad2d(a.astype(jnp.bfloat16), Mp, Kp)
    b_p = _pad2d(b.astype(jnp.bfloat16), Kp, Np)
    bias_p = _pad2d(bias.reshape(1, Nn).astype(jnp.float32), 1, Np)
    out = pl.pallas_call(
        _gemm_bias_relu_kernel,
        out_shape=jax.ShapeDtypeStruct((Mp, Np), out_dtype),
        grid_spec=pltpu.PrefetchScalarGridSpec(
            num_scalar_prefetch=0,
            grid=(Mp // tm,),
            in_specs=[pl.BlockSpec((tm, Kp), lambda i: (i, 0)),
                      pl.BlockSpec((Kp, Np), lambda i: (0, 0)),   # weights resident
                      pl.BlockSpec((1, Np), lambda i: (0, 0))],
            out_specs=pl.BlockSpec((tm, Np), lambda i: (i, 0)),
        ),
        compiler_params=pltpu.CompilerParams(
            dimension_semantics=("parallel",),
            vmem_limit_bytes=_VMEM_LIMIT),
    )(a_p, b_p, bias_p)
    return out[:M, :]


# ------------------------------ glue (weights, im2col) -----------------------

def _im2col(x_nhwc, kh, kw, stride, pad):
    """Patches (N, Ho, Wo, kh*kw*C) with (tap, C) ordering. Only used for stride-2."""
    x = jnp.pad(x_nhwc, ((0, 0), (pad, pad), (pad, pad), (0, 0)))
    N, Hp, Wp, C = x.shape
    Ho = (Hp - kh) // stride + 1
    Wo = (Wp - kw) // stride + 1
    cols = []
    for i in range(kh):
        for j in range(kw):
            cols.append(x[:, i:i + stride * Ho:stride, j:j + stride * Wo:stride, :])
    patches = jnp.stack(cols, axis=3)
    return patches.reshape(N, Ho, Wo, kh * kw * C), Ho, Wo


def _weight_to_matrix(w_oihw):
    """(O, I, kh, kw) -> (kh*kw*I, O), matching the im2col ordering."""
    O, I, kh, kw = w_oihw.shape
    return jnp.transpose(w_oihw, (2, 3, 1, 0)).reshape(kh * kw * I, O)


def _weight_to_taps(w_oihw, cinp, coutp, col_scale=None):
    """(O, I, 3, 3) -> (9, cinp, coutp) tap-major, channel-padded; optionally folds a
    per-output-channel scale (bn2 gamma/sqrt(var)) into the columns."""
    O, I, kh, kw = w_oihw.shape
    w = jnp.transpose(w_oihw, (2, 3, 1, 0)).reshape(kh * kw, I, O)
    if col_scale is not None:
        w = w * col_scale.reshape(1, 1, O)
    return jnp.pad(w, ((0, 0), (0, cinp - I), (0, coutp - O)))


# ------------------------------ BasicBlock ----------------------------------

def basic_block_forward(x_nchw, params, stride):
    """Pallas implementation of BasicBlock.forward (eval mode, droprate=0)."""
    eps = 1e-5
    N, Cin, H, W = x_nchw.shape
    Cout = params["conv1_w"].shape[0]
    equal_in_out = (Cin == Cout) and (stride == 1)
    Cinp = _round_up(Cin, 128)
    Coutp = _round_up(Cout, 128)
    Ho = (H + 2 - 3) // stride + 1
    Wo = (W + 2 - 3) // stride + 1

    x = jnp.transpose(x_nchw, (0, 2, 3, 1)).astype(jnp.float32)    # NHWC

    g1, b1, m1, v1 = (params["bn1_" + k] for k in ("gamma", "beta", "mean", "var"))
    scale1 = g1 / jnp.sqrt(v1 + eps)
    bias1 = b1 - m1 * scale1
    g2, b2, m2, v2 = (params["bn2_" + k] for k in ("gamma", "beta", "mean", "var"))
    scale2 = g2 / jnp.sqrt(v2 + eps)
    bias2 = b2 - m2 * scale2
    bias2_p = jnp.pad(bias2, (0, Coutp - Cout)).reshape(1, Coutp)

    if equal_in_out:
        # ---- conv1: implicit im2col; bn1+relu prologue, bn2+relu epilogue fused ----
        x_pad = jnp.pad(x, ((0, 0), (1, 1), (1, 1), (0, Cinp - Cin)))
        scale1_p = jnp.pad(scale1, (0, Cinp - Cin)).reshape(1, 1, Cinp)
        bias1_p = jnp.pad(bias1, (0, Cinp - Cin)).reshape(1, 1, Cinp)
        w1_taps = _weight_to_taps(params["conv1_w"], Cinp, Coutp, col_scale=scale2)
        h2 = pallas_conv3x3(x_pad, w1_taps,
                            in_scale=scale1_p, in_bias=bias1_p,
                            out_bias=bias2_p, apply_relu=True,
                            out_dtype=jnp.bfloat16)                # (N,H,W,Coutp) bf16
    else:
        # ---- transition block: bn1+relu pass, then stride-2 conv1 as im2col GEMM ----
        x_act = pallas_bn_relu(x.reshape(N * H * W, Cin), scale1, bias1)
        x_act = x_act.reshape(N, H, W, Cin)                        # bf16
        patches, _, _ = _im2col(x_act, 3, 3, stride, 1)
        w1m = _weight_to_matrix(params["conv1_w"]) * scale2[None, :]
        h2_2d = pallas_gemm_bias_relu(patches.reshape(N * Ho * Wo, 9 * Cin),
                                      w1m, bias2, out_dtype=jnp.bfloat16)
        h2 = h2_2d.reshape(N, Ho, Wo, Coutp)                       # padded cols are 0

    # ---- conv2 (3x3, stride 1): implicit im2col, shortcut fused in the epilogue ----
    h2_pad = jnp.pad(h2, ((0, 0), (1, 1), (1, 1), (0, 0)))
    w2_taps = _weight_to_taps(params["conv2_w"], Coutp, Coutp)
    if equal_in_out:
        residual = jnp.pad(x, ((0, 0), (0, 0), (0, 0), (0, Coutp - Cout)))
        out = pallas_conv3x3(h2_pad, w2_taps, residual=residual,
                             out_dtype=jnp.float32)
    else:
        scx = x_act[:, ::stride, ::stride, :]                      # (N,Ho,Wo,Cin) bf16
        scx = jnp.pad(scx, ((0, 0), (0, 0), (0, 0), (0, Cinp - Cin)))
        wsc = params["convsc_w"].reshape(Cout, Cin).T              # (Cin, Cout)
        wsc = jnp.pad(wsc, ((0, Cinp - Cin), (0, Coutp - Cout)))
        out = pallas_conv3x3(h2_pad, w2_taps, shortcut_x=scx, shortcut_w=wsc,
                             out_dtype=jnp.float32)

    out = out[:, :, :, :Cout]
    return jnp.transpose(out, (0, 3, 1, 2))                        # back to NCHW


# ------------------------------ pure-JAX reference ---------------------------

def basic_block_reference(x_nchw, params, stride):
    eps = 1e-5
    Cin = x_nchw.shape[1]
    Cout = params["conv1_w"].shape[0]
    equal_in_out = (Cin == Cout) and (stride == 1)

    def bn(x, g, b, m, v):
        sh = (1, -1, 1, 1)
        return (x - m.reshape(sh)) / jnp.sqrt(v.reshape(sh) + eps) * g.reshape(sh) + b.reshape(sh)

    def conv(x, w, s, p):
        return lax.conv_general_dilated(
            x, w, (s, s), ((p, p), (p, p)),
            dimension_numbers=("NCHW", "OIHW", "NCHW"))

    x_act = jax.nn.relu(bn(x_nchw, params["bn1_gamma"], params["bn1_beta"],
                           params["bn1_mean"], params["bn1_var"]))
    out = conv(x_act, params["conv1_w"], stride, 1)
    out = jax.nn.relu(bn(out, params["bn2_gamma"], params["bn2_beta"],
                         params["bn2_mean"], params["bn2_var"]))
    out = conv(out, params["conv2_w"], 1, 1)
    if equal_in_out:
        shortcut = x_nchw
    else:
        shortcut = conv(x_act, params["convsc_w"], stride, 0)
    return shortcut + out


# ---------------------------------- main -------------------------------------

def make_params(key, in_planes, out_planes):
    ks = jax.random.split(key, 8)
    p = {
        "bn1_gamma": jax.random.uniform(ks[0], (in_planes,), jnp.float32, 0.5, 1.5),
        "bn1_beta": jax.random.normal(ks[1], (in_planes,), jnp.float32) * 0.1,
        "bn1_mean": jax.random.normal(ks[2], (in_planes,), jnp.float32) * 0.1,
        "bn1_var": jax.random.uniform(ks[3], (in_planes,), jnp.float32, 0.5, 1.5),
        "bn2_gamma": jax.random.uniform(ks[4], (out_planes,), jnp.float32, 0.5, 1.5),
        "bn2_beta": jax.random.normal(ks[5], (out_planes,), jnp.float32) * 0.1,
        "bn2_mean": jax.random.normal(ks[6], (out_planes,), jnp.float32) * 0.1,
        "bn2_var": jax.random.uniform(ks[7], (out_planes,), jnp.float32, 0.5, 1.5),
    }
    kw = jax.random.split(jax.random.fold_in(key, 99), 3)
    p["conv1_w"] = jax.random.normal(kw[0], (out_planes, in_planes, 3, 3), jnp.float32) * 0.1
    p["conv2_w"] = jax.random.normal(kw[1], (out_planes, out_planes, 3, 3), jnp.float32) * 0.1
    p["convsc_w"] = jax.random.normal(kw[2], (out_planes, in_planes, 1, 1), jnp.float32) * 0.1
    return p


if __name__ == "__main__":
    key = jax.random.PRNGKey(0)

    configs = [
        # (batch, in_planes, out_planes, hw, stride)
        (2, 4, 8, 16, 2),   # non-equalInOut: stride-2 conv1 (im2col GEMM) + fused 1x1 shortcut
        (2, 8, 8, 16, 1),   # equalInOut: fused bn1 prologue + identity residual epilogue
    ]
    for idx, (batch, cin, cout, hw, stride) in enumerate(configs):
        x = jax.random.normal(jax.random.fold_in(key, 10 + idx),
                              (batch, cin, hw, hw), jnp.float32)
        params = make_params(jax.random.fold_in(key, 20 + idx), cin, cout)

        fwd = jax.jit(functools.partial(basic_block_forward, stride=stride))
        out = jax.block_until_ready(fwd(x, params))

        ref = basic_block_reference(x, params, stride)
        assert out.shape == ref.shape == (batch, cout, hw // stride, hw // stride)
        max_err = float(jnp.max(jnp.abs(out - ref)))
        # bf16 MXU inputs (f32 accumulation) -> loosened tolerance vs f32 reference
        assert jnp.allclose(out, ref, atol=5e-2, rtol=5e-2), max_err

    print("KERNEL_OK")
</pallas_src>

<mosaic_0001>
module attributes {stable_mosaic.version = 11 : i64} {
  func.func @_bn_relu_kernel(%arg0: i32, %arg1: memref<256x128xf32, #tpu.memory_space<vmem>>, %arg2: memref<1x128xf32, #tpu.memory_space<vmem>>, %arg3: memref<1x128xf32, #tpu.memory_space<vmem>>, %arg4: memref<256x128xbf16, #tpu.memory_space<vmem>>) attributes {dimension_semantics = [#tpu.dimension_semantics<parallel>], iteration_bounds = array<i64: 2>, scalar_prefetch = 0 : i64, scratch_operands = 0 : i64, tpu.core_type = #tpu.core_type<tc>, window_params = [{transform_indices = @transform_0, window_bounds = array<i64: 256, 128>}, {pipeline_mode = #tpu.pipeline_mode<synchronous>, transform_indices = @transform_1, window_bounds = array<i64: 1, 128>}, {pipeline_mode = #tpu.pipeline_mode<synchronous>, transform_indices = @transform_2, window_bounds = array<i64: 1, 128>}, {transform_indices = @transform_3, window_bounds = array<i64: 256, 128>}]} {
    %c0 = arith.constant 0 : index
    %c0_0 = arith.constant 0 : index
    %0 = vector.load %arg1[%c0, %c0_0] : memref<256x128xf32, #tpu.memory_space<vmem>>, vector<256x128xf32>
    %c0_1 = arith.constant 0 : index
    %c0_2 = arith.constant 0 : index
    %1 = vector.load %arg2[%c0_1, %c0_2] : memref<1x128xf32, #tpu.memory_space<vmem>>, vector<1x128xf32>
    %2 = vector.broadcast %1 : vector<1x128xf32> to vector<256x128xf32>
    %3 = arith.mulf %0, %2 : vector<256x128xf32>
    %c0_3 = arith.constant 0 : index
    %c0_4 = arith.constant 0 : index
    %4 = vector.load %arg3[%c0_3, %c0_4] : memref<1x128xf32, #tpu.memory_space<vmem>>, vector<1x128xf32>
    %5 = vector.broadcast %4 : vector<1x128xf32> to vector<256x128xf32>
    %6 = arith.addf %3, %5 : vector<256x128xf32>
    %cst = arith.constant 0.000000e+00 : f32
    %7 = vector.broadcast %cst : f32 to vector<256x128xf32>
    %8 = arith.maximumf %6, %7 : vector<256x128xf32>
    %9 = arith.truncf %8 : vector<256x128xf32> to vector<256x128xbf16>
    %c0_5 = arith.constant 0 : index
    %c0_6 = arith.constant 0 : index
    %10 = vector.load %arg4[%c0_5, %c0_6] : memref<256x128xbf16, #tpu.memory_space<vmem>>, vector<256x128xbf16>
    tpu.vector_store %arg4[%c0_5, %c0_6], %9 {strides = array<i32>} : memref<256x128xbf16, #tpu.memory_space<vmem>>, vector<256x128xbf16>,
    return
  }
  func.func @transform_0(%arg0: i32) -> (i32, i32) {
    %c0_i32 = arith.constant 0 : i32
    %c0_i32_0 = arith.constant 0 : i32
    return %arg0, %c0_i32 : i32, i32
  }
  func.func @transform_1(%arg0: i32) -> (i32, i32) {
    %c0_i32 = arith.constant 0 : i32
    %c0_i32_0 = arith.constant 0 : i32
    %c0_i32_1 = arith.constant 0 : i32
    return %c0_i32, %c0_i32_0 : i32, i32
  }
  func.func @transform_2(%arg0: i32) -> (i32, i32) {
    %c0_i32 = arith.constant 0 : i32
    %c0_i32_0 = arith.constant 0 : i32
    %c0_i32_1 = arith.constant 0 : i32
    return %c0_i32, %c0_i32_0 : i32, i32
  }
  func.func @transform_3(%arg0: i32) -> (i32, i32) {
    %c0_i32 = arith.constant 0 : i32
    %c0_i32_0 = arith.constant 0 : i32
    return %arg0, %c0_i32 : i32, i32
  }
}

module attributes {stable_mosaic.version = 11 : i64} {
  func.func @_gemm_bias_relu_kernel(%arg0: i32, %arg1: memref<64x128xbf16, #tpu.memory_space<vmem>>, %arg2: memref<128x128xbf16, #tpu.memory_space<vmem>>, %arg3: memref<1x128xf32, #tpu.memory_space<vmem>>, %arg4: memref<64x128xbf16, #tpu.memory_space<vmem>>) attributes {dimension_semantics = [#tpu.dimension_semantics<parallel>], iteration_bounds = array<i64: 2>, scalar_prefetch = 0 : i64, scratch_operands = 0 : i64, tpu.core_type = #tpu.core_type<tc>, window_params = [{transform_indices = @transform_0, window_bounds = array<i64: 64, 128>}, {pipeline_mode = #tpu.pipeline_mode<synchronous>, transform_indices = @transform_1, window_bounds = array<i64: 128, 128>}, {pipeline_mode = #tpu.pipeline_mode<synchronous>, transform_indices = @transform_2, window_bounds = array<i64: 1, 128>}, {transform_indices = @transform_3, window_bounds = array<i64: 64, 128>}]} {
    %c0 = arith.constant 0 : index
    %c0_0 = arith.constant 0 : index
    %0 = vector.load %arg1[%c0, %c0_0] : memref<64x128xbf16, #tpu.memory_space<vmem>>, vector<64x128xbf16>
    %c0_1 = arith.constant 0 : index
    %c0_2 = arith.constant 0 : index
    %1 = vector.load %arg2[%c0_1, %c0_2] : memref<128x128xbf16, #tpu.memory_space<vmem>>, vector<128x128xbf16>
    %cst = arith.constant dense<0.000000e+00> : vector<64x128xf32>
    %2 = tpu.matmul %0, %1, %cst {dimension_numbers = #tpu.dot_dimension_numbers<[1], [0], [0], [1], [0, 0, 1, 1], [], []>} : vector<64x128xbf16>, vector<128x128xbf16>, vector<64x128xf32> -> vector<64x128xf32>
    %c0_3 = arith.constant 0 : index
    %c0_4 = arith.constant 0 : index
    %3 = vector.load %arg3[%c0_3, %c0_4] : memref<1x128xf32, #tpu.memory_space<vmem>>, vector<1x128xf32>
    %4 = vector.broadcast %3 : vector<1x128xf32> to vector<64x128xf32>
    %5 = arith.addf %2, %4 : vector<64x128xf32>
    %cst_5 = arith.constant 0.000000e+00 : f32
    %6 = vector.broadcast %cst_5 : f32 to vector<64x128xf32>
    %7 = arith.maximumf %5, %6 : vector<64x128xf32>
    %8 = arith.truncf %7 : vector<64x128xf32> to vector<64x128xbf16>
    %c0_6 = arith.constant 0 : index
    %c0_7 = arith.constant 0 : index
    %9 = vector.load %arg4[%c0_6, %c0_7] : memref<64x128xbf16, #tpu.memory_space<vmem>>, vector<64x128xbf16>
    tpu.vector_store %arg4[%c0_6, %c0_7], %8 {strides = array<i32>} : memref<64x128xbf16, #tpu.memory_space<vmem>>, vector<64x128xbf16>,
    return
  }
  func.func @transform_0(%arg0: i32) -> (i32, i32) {
    %c0_i32 = arith.constant 0 : i32
    %c0_i32_0 = arith.constant 0 : i32
    return %arg0, %c0_i32 : i32, i32
  }
  func.func @transform_1(%arg0: i32) -> (i32, i32) {
    %c0_i32 = arith.constant 0 : i32
    %c0_i32_0 = arith.constant 0 : i32
    %c0_i32_1 = arith.constant 0 : i32
    return %c0_i32, %c0_i32_0 : i32, i32
  }
  func.func @transform_2(%arg0: i32) -> (i32, i32) {
    %c0_i32 = arith.constant 0 : i32
    %c0_i32_0 = arith.constant 0 : i32
    %c0_i32_1 = arith.constant 0 : i32
    return %c0_i32, %c0_i32_0 : i32, i32
  }
  func.func @transform_3(%arg0: i32) -> (i32, i32) {
    %c0_i32 = arith.constant 0 : i32
    %c0_i32_0 = arith.constant 0 : i32
    return %arg0, %c0_i32 : i32, i32
  }
}

module attributes {stable_mosaic.version = 11 : i64} {
  func.func @_conv3x3_kernel(%arg0: i32, %arg1: memref<1x10x10x128xbf16, #tpu.memory_space<vmem>>, %arg2: memref<9x128x128xbf16, #tpu.memory_space<vmem>>, %arg3: memref<1x8x8x128xbf16, #tpu.memory_space<vmem>>, %arg4: memref<128x128xbf16, #tpu.memory_space<vmem>>, %arg5: memref<1x8x8x128xf32, #tpu.memory_space<vmem>>) attributes {dimension_semantics = [#tpu.dimension_semantics<parallel>], iteration_bounds = array<i64: 2>, scalar_prefetch = 0 : i64, scratch_operands = 0 : i64, tpu.core_type = #tpu.core_type<tc>, window_params = [{transform_indices = @transform_0, window_bounds = array<i64: 1, 10, 10, 128>}, {pipeline_mode = #tpu.pipeline_mode<synchronous>, transform_indices = @transform_1, window_bounds = array<i64: 9, 128, 128>}, {transform_indices = @transform_2, window_bounds = array<i64: 1, 8, 8, 128>}, {pipeline_mode = #tpu.pipeline_mode<synchronous>, transform_indices = @transform_3, window_bounds = array<i64: 128, 128>}, {transform_indices = @transform_4, window_bounds = array<i64: 1, 8, 8, 128>}]} {
    %c0 = arith.constant 0 : index
    %c0_0 = arith.constant 0 : index
    %c0_1 = arith.constant 0 : index
    %c0_2 = arith.constant 0 : index
    %0 = vector.load %arg1[%c0, %c0_0, %c0_1, %c0_2] : memref<1x10x10x128xbf16, #tpu.memory_space<vmem>>, vector<1x10x10x128xbf16>
    %1 = vector.shape_cast %0 : vector<1x10x10x128xbf16> to vector<10x10x128xbf16>
    %cst = arith.constant 0.000000e+00 : f32
    %2 = vector.broadcast %cst : f32 to vector<64x128xf32>
    %3 = vector.extract_strided_slice %1 {offsets = [0, 0, 0], sizes = [8, 8, 128], strides = [1, 1, 1]} : vector<10x10x128xbf16> to vector<8x8x128xbf16>
    %4 = vector.shape_cast %3 : vector<8x8x128xbf16> to vector<64x128xbf16>
    %c0_3 = arith.constant 0 : index
    %c0_4 = arith.constant 0 : index
    %c0_5 = arith.constant 0 : index
    %5 = vector.load %arg2[%c0_3, %c0_4, %c0_5] : memref<9x128x128xbf16, #tpu.memory_space<vmem>>, vector<1x128x128xbf16>
    %6 = vector.shape_cast %5 : vector<1x128x128xbf16> to vector<128x128xbf16>
    %cst_6 = arith.constant dense<0.000000e+00> : vector<64x128xf32>
    %7 = tpu.matmul %4, %6, %cst_6 {dimension_numbers = #tpu.dot_dimension_numbers<[1], [0], [0], [1], [0, 0, 1, 1], [], []>} : vector<64x128xbf16>, vector<128x128xbf16>, vector<64x128xf32> -> vector<64x128xf32>
    %8 = arith.addf %2, %7 : vector<64x128xf32>
    %9 = vector.extract_strided_slice %1 {offsets = [0, 1, 0], sizes = [8, 8, 128], strides = [1, 1, 1]} : vector<10x10x128xbf16> to vector<8x8x128xbf16>
    %10 = vector.shape_cast %9 : vector<8x8x128xbf16> to vector<64x128xbf16>
    %c1 = arith.constant 1 : index
    %c0_7 = arith.constant 0 : index
    %c0_8 = arith.constant 0 : index
    %11 = vector.load %arg2[%c1, %c0_7, %c0_8] : memref<9x128x128xbf16, #tpu.memory_space<vmem>>, vector<1x128x128xbf16>
    %12 = vector.shape_cast %11 : vector<1x128x128xbf16> to vector<128x128xbf16>
    %cst_9 = arith.constant dense<0.000000e+00> : vector<64x128xf32>
    %13 = tpu.matmul %10, %12, %cst_9 {dimension_numbers = #tpu.dot_dimension_numbers<[1], [0], [0], [1], [0, 0, 1, 1], [], []>} : vector<64x128xbf16>, vector<128x128xbf16>, vector<64x128xf32> -> vector<64x128xf32>
    %14 = arith.addf %8, %13 : vector<64x128xf32>
    %15 = vector.extract_strided_slice %1 {offsets = [0, 2, 0], sizes = [8, 8, 128], strides = [1, 1, 1]} : vector<10x10x128xbf16> to vector<8x8x128xbf16>
    %16 = vector.shape_cast %15 : vector<8x8x128xbf16> to vector<64x128xbf16>
    %c2 = arith.constant 2 : index
    %c0_10 = arith.constant 0 : index
    %c0_11 = arith.constant 0 : index
    %17 = vector.load %arg2[%c2, %c0_10, %c0_11] : memref<9x128x128xbf16, #tpu.memory_space<vmem>>, vector<1x128x128xbf16>
    %18 = vector.shape_cast %17 : vector<1x128x128xbf16> to vector<128x128xbf16>
    %cst_12 = arith.constant dense<0.000000e+00> : vector<64x128xf32>
    %19 = tpu.matmul %16, %18, %cst_12 {dimension_numbers = #tpu.dot_dimension_numbers<[1], [0], [0], [1], [0, 0, 1, 1], [], []>} : vector<64x128xbf16>, vector<128x128xbf16>, vector<64x128xf32> -> vector<64x128xf32>
    %20 = arith.addf %14, %19 : vector<64x128xf32>
    %21 = vector.extract_strided_slice %1 {offsets = [1, 0, 0], sizes = [8, 8, 128], strides = [1, 1, 1]} : vector<10x10x128xbf16> to vector<8x8x128xbf16>
    %22 = vector.shape_cast %21 : vector<8x8x128xbf16> to vector<64x128xbf16>
    %c3 = arith.constant 3 : index
    %c0_13 = arith.constant 0 : index
    %c0_14 = arith.constant 0 : index
    %23 = vector.load %arg2[%c3, %c0_13, %c0_14] : memref<9x128x128xbf16, #tpu.memory_space<vmem>>, vector<1x128x128xbf16>
    %24 = vector.shape_cast %23 : vector<1x128x128xbf16> to vector<128x128xbf16>
    %cst_15 = arith.constant dense<0.000000e+00> : vector<64x128xf32>
    %25 = tpu.matmul %22, %24, %cst_15 {dimension_numbers = #tpu.dot_dimension_numbers<[1], [0], [0], [1], [0, 0, 1, 1], [], []>} : vector<64x128xbf16>, vector<128x128xbf16>, vector<64x128xf32> -> vector<64x128xf32>
    %26 = arith.addf %20, %25 : vector<64x128xf32>
    %27 = vector.extract_strided_slice %1 {offsets = [1, 1, 0], sizes = [8, 8, 128], strides = [1, 1, 1]} : vector<10x10x128xbf16> to vector<8x8x128xbf16>
    %28 = vector.shape_cast %27 : vector<8x8x128xbf16> to vector<64x128xbf16>
    %c4 = arith.constant 4 : index
    %c0_16 = arith.constant 0 : index
    %c0_17 = arith.constant 0 : index
    %29 = vector.load %arg2[%c4, %c0_16, %c0_17] : memref<9x128x128xbf16, #tpu.memory_space<vmem>>, vector<1x128x128xbf16>
    %30 = vector.shape_cast %29 : vector<1x128x128xbf16> to vector<128x128xbf16>
    %cst_18 = arith.constant dense<0.000000e+00> : vector<64x128xf32>
    %31 = tpu.matmul %28, %30, %cst_18 {dimension_numbers = #tpu.dot_dimension_numbers<[1], [0], [0], [1], [0, 0, 1, 1], [], []>} : vector<64x128xbf16>, vector<128x128xbf16>, vector<64x128xf32> -> vector<64x128xf32>
    %32 = arith.addf %26, %31 : vector<64x128xf32>
    %33 = vector.extract_strided_slice %1 {offsets = [1, 2, 0], sizes = [8, 8, 128], strides = [1, 1, 1]} : vector<10x10x128xbf16> to vector<8x8x128xbf16>
    %34 = vector.shape_cast %33 : vector<8x8x128xbf16> to vector<64x128xbf16>
    %c5 = arith.constant 5 : index
    %c0_19 = arith.constant 0 : index
    %c0_20 = arith.constant 0 : index
    %35 = vector.load %arg2[%c5, %c0_19, %c0_20] : memref<9x128x128xbf16, #tpu.memory_space<vmem>>, vector<1x128x128xbf16>
    %36 = vector.shape_cast %35 : vector<1x128x128xbf16> to vector<128x128xbf16>
    %cst_21 = arith.constant dense<0.000000e+00> : vector<64x128xf32>
    %37 = tpu.matmul %34, %36, %cst_21 {dimension_numbers = #tpu.dot_dimension_numbers<[1], [0], [0], [1], [0, 0, 1, 1], [], []>} : vector<64x128xbf16>, vector<128x128xbf16>, vector<64x128xf32> -> vector<64x128xf32>
    %38 = arith.addf %32, %37 : vector<64x128xf32>
    %39 = vector.extract_strided_slice %1 {offsets = [2, 0, 0], sizes = [8, 8, 128], strides = [1, 1, 1]} : vector<10x10x128xbf16> to vector<8x8x128xbf16>
    %40 = vector.shape_cast %39 : vector<8x8x128xbf16> to vector<64x128xbf16>
    %c6 = arith.constant 6 : index
    %c0_22 = arith.constant 0 : index
    %c0_23 = arith.constant 0 : index
    %41 = vector.load %arg2[%c6, %c0_22, %c0_23] : memref<9x128x128xbf16, #tpu.memory_space<vmem>>, vector<1x128x128xbf16>
    %42 = vector.shape_cast %41 : vector<1x128x128xbf16> to vector<128x128xbf16>
    %cst_24 = arith.constant dense<0.000000e+00> : vector<64x128xf32>
    %43 = tpu.matmul %40, %42, %cst_24 {dimension_numbers = #tpu.dot_dimension_numbers<[1], [0], [0], [1], [0, 0, 1, 1], [], []>} : vector<64x128xbf16>, vector<128x128xbf16>, vector<64x128xf32> -> vector<64x128xf32>
    %44 = arith.addf %38, %43 : vector<64x128xf32>
    %45 = vector.extract_strided_slice %1 {offsets = [2, 1, 0], sizes = [8, 8, 128], strides = [1, 1, 1]} : vector<10x10x128xbf16> to vector<8x8x128xbf16>
    %46 = vector.shape_cast %45 : vector<8x8x128xbf16> to vector<64x128xbf16>
    %c7 = arith.constant 7 : index
    %c0_25 = arith.constant 0 : index
    %c0_26 = arith.constant 0 : index
    %47 = vector.load %arg2[%c7, %c0_25, %c0_26] : memref<9x128x128xbf16, #tpu.memory_space<vmem>>, vector<1x128x128xbf16>
    %48 = vector.shape_cast %47 : vector<1x128x128xbf16> to vector<128x128xbf16>
    %cst_27 = arith.constant dense<0.000000e+00> : vector<64x128xf32>
    %49 = tpu.matmul %46, %48, %cst_27 {dimension_numbers = #tpu.dot_dimension_numbers<[1], [0], [0], [1], [0, 0, 1, 1], [], []>} : vector<64x128xbf16>, vector<128x128xbf16>, vector<64x128xf32> -> vector<64x128xf32>
    %50 = arith.addf %44, %49 : vector<64x128xf32>
    %51 = vector.extract_strided_slice %1 {offsets = [2, 2, 0], sizes = [8, 8, 128], strides = [1, 1, 1]} : vector<10x10x128xbf16> to vector<8x8x128xbf16>
    %52 = vector.shape_cast %51 : vector<8x8x128xbf16> to vector<64x128xbf16>
    %c8 = arith.constant 8 : index
    %c0_28 = arith.constant 0 : index
    %c0_29 = arith.constant 0 : index
    %53 = vector.load %arg2[%c8, %c0_28, %c0_29] : memref<9x128x128xbf16, #tpu.memory_space<vmem>>, vector<1x128x128xbf16>
    %54 = vector.shape_cast %53 : vector<1x128x128xbf16> to vector<128x128xbf16>
    %cst_30 = arith.constant dense<0.000000e+00> : vector<64x128xf32>
    %55 = tpu.matmul %52, %54, %cst_30 {dimension_numbers = #tpu.dot_dimension_numbers<[1], [0], [0], [1], [0, 0, 1, 1], [], []>} : vector<64x128xbf16>, vector<128x128xbf16>, vector<64x128xf32> -> vector<64x128xf32>
    %56 = arith.addf %50, %55 : vector<64x128xf32>
    %c0_31 = arith.constant 0 : index
    %c0_32 = arith.constant 0 : index
    %c0_33 = arith.constant 0 : index
    %c0_34 = arith.constant 0 : index
    %57 = vector.load %arg3[%c0_31, %c0_32, %c0_33, %c0_34] : memref<1x8x8x128xbf16, #tpu.memory_space<vmem>>, vector<1x8x8x128xbf16>
    %58 = vector.shape_cast %57 : vector<1x8x8x128xbf16> to vector<8x8x128xbf16>
    %59 = vector.shape_cast %58 : vector<8x8x128xbf16> to vector<64x128xbf16>
    %c0_35 = arith.constant 0 : index
    %c0_36 = arith.constant 0 : index
    %60 = vector.load %arg4[%c0_35, %c0_36] : memref<128x128xbf16, #tpu.memory_space<vmem>>, vector<128x128xbf16>
    %cst_37 = arith.constant dense<0.000000e+00> : vector<64x128xf32>
    %61 = tpu.matmul %59, %60, %cst_37 {dimension_numbers = #tpu.dot_dimension_numbers<[1], [0], [0], [1], [0, 0, 1, 1], [], []>} : vector<64x128xbf16>, vector<128x128xbf16>, vector<64x128xf32> -> vector<64x128xf32>
    %62 = arith.addf %56, %61 : vector<64x128xf32>
    %63 = vector.shape_cast %62 : vector<64x128xf32> to vector<8x8x128xf32>
    %c0_38 = arith.constant 0 : index
    %c0_39 = arith.constant 0 : index
    %c0_40 = arith.constant 0 : index
    %c0_41 = arith.constant 0 : index
    %64 = vector.load %arg5[%c0_38, %c0_39, %c0_40, %c0_41] : memref<1x8x8x128xf32, #tpu.memory_space<vmem>>, vector<1x8x8x128xf32>
    %65 = vector.shape_cast %64 : vector<1x8x8x128xf32> to vector<8x8x128xf32>
    %66 = vector.shape_cast %63 : vector<8x8x128xf32> to vector<1x8x8x128xf32>
    tpu.vector_store %arg5[%c0_38, %c0_39, %c0_40, %c0_41], %66 {strides = array<i32>} : memref<1x8x8x128xf32, #tpu.memory_space<vmem>>, vector<1x8x8x128xf32>,
    return
  }
  func.func @transform_0(%arg0: i32) -> (i32, i32, i32, i32) {
    %c0_i32 = arith.constant 0 : i32
    %c0_i32_0 = arith.constant 0 : i32
    %c0_i32_1 = arith.constant 0 : i32
    %c0_i32_2 = arith.constant 0 : i32
    return %arg0, %c0_i32, %c0_i32_0, %c0_i32_1 : i32, i32, i32, i32
  }
  func.func @transform_1(%arg0: i32) -> (i32, i32, i32) {
    %c0_i32 = arith.constant 0 : i32
    %c0_i32_0 = arith.constant 0 : i32
    %c0_i32_1 = arith.constant 0 : i32
    %c0_i32_2 = arith.constant 0 : i32
    return %c0_i32, %c0_i32_0, %c0_i32_1 : i32, i32, i32
  }
  func.func @transform_2(%arg0: i32) -> (i32, i32, i32, i32) {
    %c0_i32 = arith.constant 0 : i32
    %c0_i32_0 = arith.constant 0 : i32
    %c0_i32_1 = arith.constant 0 : i32
    %c0_i32_2 = arith.constant 0 : i32
    return %arg0, %c0_i32, %c0_i32_0, %c0_i32_1 : i32, i32, i32, i32
  }
  func.func @transform_3(%arg0: i32) -> (i32, i32) {
    %c0_i32 = arith.constant 0 : i32
    %c0_i32_0 = arith.constant 0 : i32
    %c0_i32_1 = arith.constant 0 : i32
    return %c0_i32, %c0_i32_0 : i32, i32
  }
  func.func @transform_4(%arg0: i32) -> (i32, i32, i32, i32) {
    %c0_i32 = arith.constant 0 : i32
    %c0_i32_0 = arith.constant 0 : i32
    %c0_i32_1 = arith.constant 0 : i32
    %c0_i32_2 = arith.constant 0 : i32
    return %arg0, %c0_i32, %c0_i32_0, %c0_i32_1 : i32, i32, i32, i32
  }
}

</mosaic_0001>

<bundles_post_ra>
// kernel: basic_block_forward.3
= control target key start
LH: loop header
LB: loop body
LE: loop exit
PB: predicated region body
PF: predicated region fallthrough
CT: control target
= control target key end

     0   :  { %s740_s12 = smov 0   ;;  %s887_s0 = inlined_call_operand.vmem [shape: f32[512,128], index: 0, kind: input, shape index: {}]   ;;  %s888_s1 = inlined_call_operand.vmem [shape: f32[1,128], index: 1, kind: input, shape index: {}]   ;;  %s889_s2 = inlined_call_operand.vmem [shape: f32[1,128], index: 2, kind: input, shape index: {}]   ;;  %s890_s3 = inlined_call_operand.vmem [shape: bf16[512,128], index: 3, kind: output, shape index: {}]  }
   0x1 LB: > { %s532_s13 = sadd.s32 4294967295, %s718_s12   ;;  %p536_p0 = scmp.ge.s32.totalorder %s718_s12, 1  ;;  %s718_s12 = sphi %s740_s12, %s13_s12  }
   0x2   : > { %p138_p1 = scmp.lt.s32.totalorder %s718_s12, 3 }
   0x4   : > { %p139_p2 = pnand %p536_p0, %p138_p1 }
   0x5   : > { %s537_s14 = sshll.u32 (!%p139_p2), %s532_s13, 5  ;;  %v754_v0 = vld [vmem:[%s888_s1] ss:$0 sm:$0xff] (!%p139_p2) }
   0x6   : > { %142 = sbr.rel (%p139_p2) target bundleno = 51 (0x33), region = 32  ;;  %p163_p3 = scmp.lt.s32.totalorder (!%p139_p2), %s537_s14, 63  ;;  %v764_v1 = vld [vmem:[%s889_s2] ss:$0 sm:$0xff] (!%p139_p2) }
   0xd   : > { %s892_s14 = smov (!%p163_p3, %s537_s14), 63 }
   0xe   : > { %s538_s15 = sshll.u32 %s892_s14, 3  ;;  %s540_s23 = sshll.u32 %s892_s14, 2 }
   0xf   : > { %s759_s20 = scalar_lea.vmem %s887_s0, %s538_s15  ;;  %s796_s26 = scalar_lea.vmem %s890_s3, %s540_s23 }
  0x10   : > { %v174_v2 = vld [vmem:[%s759_s20] sm:$0xff]  ;;  %v175_v3 = vld [vmem:[%s759_s20 + $0x8] sm:$0xff]  ;;  %v176_v4 = vld [vmem:[%s759_s20 + $0x10] sm:$0xff] }
  0x11   : > { %v213_v5 = vmul.f32 %v754_v0, %v174_v2  ;;  %v214_v6 = vmul.f32 %v754_v0, %v175_v3  ;;  %v177_v7 = vld [vmem:[%s759_s20 + $0x18] sm:$0xff]  ;;  %v215_v8 = vmul.f32 %v754_v0, %v176_v4  ;;  %v178_v9 = vld [vmem:[%s759_s20 + $0x20] sm:$0xff]  ;;  %v179_v10 = vld [vmem:[%s759_s20 + $0x28] sm:$0xff] }
  0x12   : > { %v216_v11 = vmul.f32 %v754_v0, %v177_v7  ;;  %v217_v12 = vmul.f32 %v754_v0, %v178_v9  ;;  %v218_v13 = vmul.f32 %v754_v0, %v179_v10  ;;  %v180_v14 = vld [vmem:[%s759_s20 + $0x30] sm:$0xff]  ;;  %v181_v15 = vld [vmem:[%s759_s20 + $0x38] sm:$0xff]  ;;  %v182_v24 = vld [vmem:[%s759_s20 + $0x40] sm:$0xff] }
  0x13   : > { %v252_v16 = vadd.f32 %v764_v1, %v213_v5  ;;  %v253_v17 = vadd.f32 %v764_v1, %v214_v6  ;;  %v254_v18 = vadd.f32 %v764_v1, %v215_v8  ;;  %v219_v19 = vmul.f32 %v754_v0, %v180_v14  ;;  %v183_v25 = vld [vmem:[%s759_s20 + $0x48] sm:$0xff]  ;;  %v184_v30 = vld [vmem:[%s759_s20 + $0x50] sm:$0xff]  ;;  %v185_v35 = vld [vmem:[%s759_s20 + $0x58] sm:$0xff] }
  0x14   : > { %v255_v20 = vadd.f32 %v764_v1, %v216_v11  ;;  %v256_v21 = vadd.f32 %v764_v1, %v217_v12  ;;  %v257_v22 = vadd.f32 %v764_v1, %v218_v13  ;;  %v220_v23 = vmul.f32 %v754_v0, %v181_v15  ;;  %v186_v36 = vld [vmem:[%s759_s20 + $0x60] sm:$0xff]  ;;  %v187_v41 = vld [vmem:[%s759_s20 + $0x68] sm:$0xff]  ;;  %v188_v42 = vld [vmem:[%s759_s20 + $0x70] sm:$0xff] }
  0x15   : > { %v284_v26 = vmax.f32 %v252_v16, 0.0  ;;  %v285_v27 = vmax.f32 %v253_v17, 0.0  ;;  %v286_v28 = vmax.f32 %v254_v18, 0.0  ;;  %v258_v29 = vadd.f32 %v764_v1, %v219_v19  ;;  %v189_v51 = vld [vmem:[%s759_s20 + $0x78] sm:$0xff]  ;;  %v190_v56 = vld [vmem:[%s759_s20 + $0x80] sm:$0xff]  ;;  %v191_v61 = vld [vmem:[%s759_s20 + $0x88] sm:$0xff] }
  0x16   : > { %v287_v31 = vmax.f32 %v255_v20, 0.0  ;;  %v288_v32 = vmax.f32 %v256_v21, 0.0  ;;  %v289_v33 = vmax.f32 %v257_v22, 0.0  ;;  %v259_v34 = vadd.f32 %v764_v1, %v220_v23  ;;  %v192_v4 = vld [vmem:[%s759_s20 + $0x90] sm:$0xff]  ;;  %v193_v5 = vld [vmem:[%s759_s20 + $0x98] sm:$0xff]  ;;  %v194_v10 = vld [vmem:[%s759_s20 + $0xa0] sm:$0xff] }
  0x17   : > { %v612_v37 = vpack.c.bf16 %v285_v27, %v284_v26  ;;  %v290_v38 = vmax.f32 %v258_v29, 0.0  ;;  %v221_v39 = vmul.f32 %v754_v0, %v182_v24  ;;  %v222_v40 = vmul.f32 %v754_v0, %v183_v25  ;;  %v195_v15 = vld [vmem:[%s759_s20 + $0xa8] sm:$0xff]  ;;  %v196_v20 = vld [vmem:[%s759_s20 + $0xb0] sm:$0xff]  ;;  %v197_v25 = vld [vmem:[%s759_s20 + $0xb8] sm:$0xff] }
  0x18   : > { %v617_v43 = vpack.c.bf16 %v287_v31, %v286_v28  ;;  %v622_v44 = vpack.c.bf16 %v289_v33, %v288_v32  ;;  %v291_v45 = vmax.f32 %v259_v34, 0.0  ;;  %v223_v46 = vmul.f32 %v754_v0, %v184_v30  ;;  %v198_v30 = vld [vmem:[%s759_s20 + $0xc0] sm:$0xff] }
  0x19   : > { %613 = vst [vmem:[%s796_s26] sm:$0xff] %v612_v37   ;;  %v260_v47 = vadd.f32 %v764_v1, %v221_v39  ;;  %v261_v48 = vadd.f32 %v764_v1, %v222_v40  ;;  %v224_v49 = vmul.f32 %v754_v0, %v185_v35  ;;  %v225_v50 = vmul.f32 %v754_v0, %v186_v36  ;;  %v199_v35 = vld [vmem:[%s759_s20 + $0xc8] sm:$0xff]  ;;  %v200_v40 = vld [vmem:[%s759_s20 + $0xd0] sm:$0xff] }
  0x1a   : > { %689 = vst [vmem:[%s796_s26 + $0x8] sm:$0xff] %v617_v43   ;;  %690 = vst [vmem:[%s796_s26 + $0x10] sm:$0xff] %v622_v44   ;;  %v627_v52 = vpack.c.bf16 %v291_v45, %v290_v38  ;;  %v262_v53 = vadd.f32 %v764_v1, %v223_v46  ;;  %v226_v54 = vmul.f32 %v754_v0, %v187_v41  ;;  %v201_v41 = vld [vmem:[%s759_s20 + $0xd8] sm:$0xff]  ;;  %v202_v46 = vld [vmem:[%s759_s20 + $0xe0] sm:$0xff] }
  0x1b   : > { %v227_v55 = vmul.f32 %v754_v0, %v188_v42  ;;  %v292_v57 = vmax.f32 %v260_v47, 0.0  ;;  %v293_v58 = vmax.f32 %v261_v48, 0.0  ;;  %v263_v59 = vadd.f32 %v764_v1, %v224_v49 }
  0x1c   : > { %v264_v60 = vadd.f32 %v764_v1, %v225_v50  ;;  %691 = vst [vmem:[%s796_s26 + $0x18] sm:$0xff] %v627_v52   ;;  %v294_v62 = vmax.f32 %v262_v53, 0.0  ;;  %v265_v63 = vadd.f32 %v764_v1, %v226_v54  ;;  %v228_v2 = vmul.f32 %v754_v0, %v189_v51  ;;  %v203_v51 = vld [vmem:[%s759_s20 + $0xe8] sm:$0xff] }
  0x1d   : > { %v266_v3 = vadd.f32 %v764_v1, %v227_v55  ;;  %v632_v6 = vpack.c.bf16 %v293_v58, %v292_v57  ;;  %v295_v7 = vmax.f32 %v263_v59, 0.0  ;;  %v229_v9 = vmul.f32 %v754_v0, %v190_v56  ;;  %v204_v56 = vld [vmem:[%s759_s20 + $0xf0] sm:$0xff] }
  0x1e   : > { %v296_v8 = vmax.f32 %v264_v60, 0.0  ;;  %v297_v11 = vmax.f32 %v265_v63, 0.0  ;;  %v267_v12 = vadd.f32 %v764_v1, %v228_v2  ;;  %v230_v14 = vmul.f32 %v754_v0, %v191_v61  ;;  %v205_v61 = vld [vmem:[%s759_s20 + $0xf8] sm:$0xff] }
  0x1f   : > { %v298_v13 = vmax.f32 %v266_v3, 0.0  ;;  %692 = vst [vmem:[%s796_s26 + $0x20] sm:$0xff] %v632_v6   ;;  %v637_v16 = vpack.c.bf16 %v295_v7, %v294_v62  ;;  %v268_v17 = vadd.f32 %v764_v1, %v229_v9  ;;  %v231_v18 = vmul.f32 %v754_v0, %v192_v4 }
  0x20   : > { %v232_v19 = vmul.f32 %v754_v0, %v193_v5  ;;  %v642_v21 = vpack.c.bf16 %v297_v11, %v296_v8  ;;  %v299_v22 = vmax.f32 %v267_v12, 0.0  ;;  %v269_v23 = vadd.f32 %v764_v1, %v230_v14 }
  0x21   : > { %v233_v24 = vmul.f32 %v754_v0, %v194_v10  ;;  %693 = vst [vmem:[%s796_s26 + $0x28] sm:$0xff] %v637_v16   ;;  %v300_v26 = vmax.f32 %v268_v17, 0.0  ;;  %v270_v27 = vadd.f32 %v764_v1, %v231_v18  ;;  %v234_v29 = vmul.f32 %v754_v0, %v195_v15 }
  0x22   : > { %v271_v28 = vadd.f32 %v764_v1, %v232_v19  ;;  %694 = vst [vmem:[%s796_s26 + $0x30] sm:$0xff] %v642_v21   ;;  %v647_v31 = vpack.c.bf16 %v299_v22, %v298_v13  ;;  %v301_v32 = vmax.f32 %v269_v23, 0.0  ;;  %v235_v34 = vmul.f32 %v754_v0, %v196_v20 }
  0x23   : > { %v272_v33 = vadd.f32 %v764_v1, %v233_v24  ;;  %v302_v36 = vmax.f32 %v270_v27, 0.0  ;;  %v273_v38 = vadd.f32 %v764_v1, %v234_v29  ;;  %v236_v39 = vmul.f32 %v754_v0, %v197_v25 }
  0x24   : > { %v303_v37 = vmax.f32 %v271_v28, 0.0  ;;  %695 = vst [vmem:[%s796_s26 + $0x38] sm:$0xff] %v647_v31   ;;  %v652_v42 = vpack.c.bf16 %v301_v32, %v300_v26  ;;  %v274_v44 = vadd.f32 %v764_v1, %v235_v34  ;;  %v237_v45 = vmul.f32 %v754_v0, %v198_v30 }
  0x25   : > { %v304_v43 = vmax.f32 %v272_v33, 0.0  ;;  %v305_v48 = vmax.f32 %v273_v38, 0.0  ;;  %v275_v49 = vadd.f32 %v764_v1, %v236_v39  ;;  %v238_v50 = vmul.f32 %v754_v0, %v199_v35 }
  0x26   : > { %v657_v47 = vpack.c.bf16 %v303_v37, %v302_v36  ;;  %696 = vst [vmem:[%s796_s26 + $0x40] sm:$0xff] %v652_v42   ;;  %v306_v52 = vmax.f32 %v274_v44, 0.0  ;;  %v276_v53 = vadd.f32 %v764_v1, %v237_v45  ;;  %v239_v54 = vmul.f32 %v754_v0, %v200_v40 }
  0x27   : > { %v240_v55 = vmul.f32 %v754_v0, %v201_v41  ;;  %v662_v57 = vpack.c.bf16 %v305_v48, %v304_v43  ;;  %v307_v58 = vmax.f32 %v275_v49, 0.0  ;;  %v277_v59 = vadd.f32 %v764_v1, %v238_v50 }
  0x28   : > { %697 = vst [vmem:[%s796_s26 + $0x48] sm:$0xff] %v657_v47   ;;  %v241_v60 = vmul.f32 %v754_v0, %v202_v46  ;;  %v308_v62 = vmax.f32 %v276_v53, 0.0  ;;  %v278_v63 = vadd.f32 %v764_v1, %v239_v54  ;;  %v242_v3 = vmul.f32 %v754_v0, %v203_v51 }
  0x29   : > { %v279_v2 = vadd.f32 %v764_v1, %v240_v55  ;;  %698 = vst [vmem:[%s796_s26 + $0x50] sm:$0xff] %v662_v57   ;;  %v667_v4 = vpack.c.bf16 %v307_v58, %v306_v52  ;;  %v309_v5 = vmax.f32 %v277_v59, 0.0  ;;  %v243_v7 = vmul.f32 %v754_v0, %v204_v56 }
  0x2a   : > { %v280_v6 = vadd.f32 %v764_v1, %v241_v60  ;;  %v310_v8 = vmax.f32 %v278_v63, 0.0  ;;  %v281_v10 = vadd.f32 %v764_v1, %v242_v3  ;;  %v244_v11 = vmul.f32 %v754_v0, %v205_v61 }
  0x2b   : > { %v311_v9 = vmax.f32 %v279_v2, 0.0  ;;  %699 = vst [vmem:[%s796_s26 + $0x58] sm:$0xff] %v667_v4   ;;  %v672_v12 = vpack.c.bf16 %v309_v5, %v308_v62  ;;  %v282_v14 = vadd.f32 %v764_v1, %v243_v7 }
  0x2c   : > { %v312_v13 = vmax.f32 %v280_v6, 0.0  ;;  %v313_v16 = vmax.f32 %v281_v10, 0.0  ;;  %v283_v17 = vadd.f32 %v764_v1, %v244_v11 }
  0x2d   : > { %v677_v15 = vpack.c.bf16 %v311_v9, %v310_v8  ;;  %700 = vst [vmem:[%s796_s26 + $0x60] sm:$0xff] %v672_v12   ;;  %v314_v18 = vmax.f32 %v282_v14, 0.0 }
  0x2e   : > { %v682_v19 = vpack.c.bf16 %v313_v16, %v312_v13  ;;  %v315_v20 = vmax.f32 %v283_v17, 0.0 }
  0x2f   : > { %701 = vst [vmem:[%s796_s26 + $0x68] sm:$0xff] %v677_v15  }
  0x30   : > { %702 = vst [vmem:[%s796_s26 + $0x70] sm:$0xff] %v682_v19   ;;  %v687_v21 = vpack.c.bf16 %v315_v20, %v314_v18 }
  0x32   : > { %703 = vst [vmem:[%s796_s26 + $0x78] sm:$0xff] %v687_v21  }
  0x33 PF: > { %s13_s12 = sadd.s32 1, %s718_s12  }
  0x34   : > { %p10_p4 = scmp.ge.s32.totalorder %s13_s12, 4  }
  0x36   :  { %12 = sbr.rel (!%p10_p4) target bundleno = 1 (0x1), region = 62 }

// kernel: basic_block_forward.4
= control target key start
LH: loop header
LB: loop body
LE: loop exit
PB: predicated region body
PF: predicated region fallthrough
CT: control target
= control target key end

     0   :  { %s610_s12 = smov 0   ;;  %s667_s0 = inlined_call_operand.vmem [shape: bf16[128,128], index: 0, kind: input, shape index: {}]   ;;  %s668_s1 = inlined_call_operand.vmem [shape: bf16[128,128], index: 1, kind: input, shape index: {}]   ;;  %s669_s2 = inlined_call_operand.vmem [shape: f32[1,128], index: 2, kind: input, shape index: {}]   ;;  %s670_s3 = inlined_call_operand.vmem [shape: bf16[128,128], index: 3, kind: output, shape index: {}]  }
   0x1 LB: > { %s447_s13 = sadd.s32 4294967295, %s588_s12   ;;  %p451_p0 = scmp.ge.s32.totalorder %s588_s12, 1  ;;  %s588_s12 = sphi %s610_s12, %s13_s12  }
   0x2   : > { %p138_p1 = scmp.lt.s32.totalorder %s588_s12, 3 }
   0x4   : > { %p139_p2 = pnand %p451_p0, %p138_p1 }
   0x5   : > { %v570_v0 = vld [vmem:[%s668_s1] sm:$0xff] (!%p139_p2)   ;;  %s452_s16 = sshll.u32 (!%p139_p2), %s447_s13, 3  ;;  %v571_v1 = vld [vmem:[%s668_s1 + $0x8] sm:$0xff] (!%p139_p2)   ;;  %v572_v2 = vld [vmem:[%s668_s1 + $0x10] sm:$0xff] (!%p139_p2)  }
   0x6   : > { %142 = sbr.rel (%p139_p2) target bundleno = 260 (0x104), region = 32  ;;  %p163_p3 = scmp.lt.s32.totalorder (!%p139_p2), %s452_s16, 15  ;;  %522 = vmatprep.subr.bf16.mxu0 (!%p139_p2), %v570_v0  ;;  %546 = vmatprep.subr.bf16.mxu1 (!%p139_p2), %v570_v0  ;;  %v573_v3 = vld [vmem:[%s668_s1 + $0x18] sm:$0xff] (!%p139_p2)   ;;  %v574_v6 = vld [vmem:[%s668_s1 + $0x20] sm:$0xff] (!%p139_p2)   ;;  %v575_v7 = vld [vmem:[%s668_s1 + $0x28] sm:$0xff] (!%p139_p2)  }
   0x7   : > { %523 = vmatpush3.bf16.msra.mxu0 (!%p139_p2), %v570_v0  ;;  %554 = vmatpush3.bf16.msra.mxu1 (!%p139_p2), %v570_v0  ;;  %v576_v8 = vld [vmem:[%s668_s1 + $0x30] sm:$0xff] (!%p139_p2)   ;;  %v577_v9 = vld [vmem:[%s668_s1 + $0x38] sm:$0xff] (!%p139_p2)   ;;  %v456_v12 = vld [vmem:[%s669_s2] ss:$0 sm:$0xff] (!%p139_p2) }
   0x8   : > { %524 = vmatprep.subr.bf16.mxu0 (!%p139_p2), %v571_v1  ;;  %547 = vmatprep.subr.bf16.mxu1 (!%p139_p2), %v571_v1 }
   0xb   : > { %525 = vmatpush3.bf16.msra.mxu0 (!%p139_p2), %v571_v1  ;;  %555 = vmatpush3.bf16.msra.mxu1 (!%p139_p2), %v571_v1 }
   0xc   : > { %526 = vmatprep.subr.bf16.mxu0 (!%p139_p2), %v572_v2  ;;  %548 = vmatprep.subr.bf16.mxu1 (!%p139_p2), %v572_v2 }
   0xd   : > { %s672_s16 = smov (!%p163_p3, %s452_s16), 15 }
   0xe   : > { %s453_s21 = sshll.u32 %s672_s16, 2 }
   0xf   : > { %s635_s24 = scalar_lea.vmem %s667_s0, %s453_s21  ;;  %527 = vmatpush3.bf16.msra.mxu0 %v572_v2  ;;  %556 = vmatpush3.bf16.msra.mxu1 %v572_v2  ;;  %s172_s13 = scalar_lea.vmem %s670_s3, %s453_s21 }
  0x10   : > { %v578_v4 = vld [vmem:[%s635_s24] sm:$0xff]   ;;  %v579_v5 = vld [vmem:[%s635_s24 + $0x10] sm:$0xff]   ;;  %528 = vmatprep.subr.bf16.mxu0 %v573_v3  ;;  %549 = vmatprep.subr.bf16.mxu1 %v573_v3  ;;  %v580_v10 = vld [vmem:[%s635_s24 + $0x8] sm:$0xff]  }
  0x11   : > { %538 = vmatprep.mubr.bf16.mxu0 %v578_v4  ;;  %542 = vmatprep.mubr.bf16.mxu1 %v579_v5  ;;  %v581_v11 = vld [vmem:[%s635_s24 + $0x18] sm:$0xff]  }
  0x13   : > { %529 = vmatpush3.bf16.msra.mxu0 %v573_v3  ;;  %557 = vmatpush3.bf16.msra.mxu1 %v573_v3 }
  0x14   : > { %530 = vmatprep.subr.bf16.mxu0 %v574_v6  ;;  %550 = vmatprep.subr.bf16.mxu1 %v574_v6 }
  0x17   : > { %531 = vmatpush3.bf16.msra.mxu0 %v574_v6  ;;  %558 = vmatpush3.bf16.msra.mxu1 %v574_v6 }
  0x18   : > { %532 = vmatprep.subr.bf16.mxu0 %v575_v7  ;;  %551 = vmatprep.subr.bf16.mxu1 %v575_v7 }
  0x1b   : > { %533 = vmatpush3.bf16.msra.mxu0 %v575_v7  ;;  %559 = vmatpush3.bf16.msra.mxu1 %v575_v7 }
  0x1c   : > { %534 = vmatprep.subr.bf16.mxu0 %v576_v8  ;;  %552 = vmatprep.subr.bf16.mxu1 %v576_v8 }
  0x1f   : > { %535 = vmatpush3.bf16.msra.mxu0 %v576_v8  ;;  %560 = vmatpush3.bf16.msra.mxu1 %v576_v8 }
  0x20   : > { %536 = vmatprep.subr.bf16.mxu0 %v577_v9  ;;  %553 = vmatprep.subr.bf16.mxu1 %v577_v9 }
  0x23   : > { %537 = vmatpush3.bf16.msra.mxu0 %v577_v9  ;;  %561 = vmatpush3.bf16.msra.mxu1 %v577_v9 }
  0x26   : > { %539 = vmatmul.mubr.bf16.vlgmr.msra.gmra.mrb[0].mxu0 %v580_v10  ;;  %543 = vmatmul.mubr.bf16.vlgmr.msra.gmra.mrb[0].mxu1 %v581_v11 }
  0xf9   : > { %v540_v13 = vpop.f32.mrb[0].mxu0  ;;  %v544_v14 = vpop.f32.mrb[0].mxu1 }
  0xfa   : > { %v321_v15 = vadd.f32 %v540_v13, %v456_v12  ;;  %v337_v16 = vadd.f32 %v544_v14, %v456_v12  ;;  %v312_v17 = vpop.f32.mrb[1].mxu0  ;;  %v328_v18 = vpop.f32.mrb[1].mxu1 }
  0xfb   : > { %v313_v19 = vadd.f32 %v456_v12, %v312_v17  ;;  %v329_v20 = vadd.f32 %v456_v12, %v328_v18  ;;  %v541_v21 = vpop.f32.mrb[2].mxu0  ;;  %v545_v22 = vpop.f32.mrb[2].mxu1 }
  0xfc   : > { %v324_v23 = vadd.f32 %v541_v21, %v456_v12  ;;  %v340_v24 = vadd.f32 %v545_v22, %v456_v12  ;;  %v315_v25 = vpop.f32.mrb[3].mxu0  ;;  %v331_v26 = vpop.f32.mrb[3].mxu1  ;;  %v345_v29 = vmax.f32 %v321_v15, 0.0  ;;  %v349_v30 = vmax.f32 %v337_v16, 0.0 }
  0xfd   : > { %v316_v27 = vadd.f32 %v456_v12, %v315_v25  ;;  %v332_v28 = vadd.f32 %v456_v12, %v331_v26  ;;  %v343_v33 = vmax.f32 %v313_v19, 0.0  ;;  %v347_v34 = vmax.f32 %v329_v20, 0.0 }
  0xfe   : > { %v346_v31 = vmax.f32 %v324_v23, 0.0  ;;  %v350_v32 = vmax.f32 %v340_v24, 0.0 }
  0xff   : > { %v344_v35 = vmax.f32 %v316_v27, 0.0  ;;  %v348_v36 = vmax.f32 %v332_v28, 0.0 }
 0x100   : > { %v495_v37 = vpack.c.bf16 %v346_v31, %v345_v29  ;;  %v505_v38 = vpack.c.bf16 %v350_v32, %v349_v30 }
 0x101   : > { %v490_v39 = vpack.c.bf16 %v344_v35, %v343_v33  ;;  %v500_v40 = vpack.c.bf16 %v348_v36, %v347_v34 }
 0x102   : > { %507 = vst [vmem:[%s172_s13 + $0x8] sm:$0xff] %v495_v37   ;;  %509 = vst [vmem:[%s172_s13 + $0x18] sm:$0xff] %v505_v38  }
 0x103   : > { %491 = vst [vmem:[%s172_s13] sm:$0xff] %v490_v39   ;;  %508 = vst [vmem:[%s172_s13 + $0x10] sm:$0xff] %v500_v40  }
 0x104 PF: > { %s13_s12 = sadd.s32 1, %s588_s12  }
 0x105   : > { %p10_p4 = scmp.ge.s32.totalorder %s13_s12, 4  }
 0x107   :  { %12 = sbr.rel (!%p10_p4) target bundleno = 1 (0x1), region = 62 }

// kernel: basic_block_forward.5
= control target key start
LH: loop header
LB: loop body
LE: loop exit
PB: predicated region body
PF: predicated region fallthrough
CT: control target
= control target key end

     0   :  { %s2828_s15 = smov 0   ;;  %s3349_s0 = inlined_call_operand.vmem [shape: bf16[2,10,10,128], index: 0, kind: input, shape index: {}]   ;;  %s3350_s1 = inlined_call_operand.vmem [shape: bf16[9,128,128], index: 1, kind: input, shape index: {}]   ;;  %s3351_s2 = inlined_call_operand.vmem [shape: bf16[2,8,8,128], index: 2, kind: input, shape index: {}]   ;;  %s3352_s3 = inlined_call_operand.vmem [shape: bf16[128,128], index: 3, kind: input, shape index: {}]   ;;  %s3353_s4 = inlined_call_operand.vmem [shape: f32[2,8,8,128], index: 4, kind: output, shape index: {}]  }
   0x1 LB: > { %s1998_s16 = sadd.s32 4294967295, %s2801_s15   ;;  %p2002_p0 = scmp.ge.s32.totalorder %s2801_s15, 1  ;;  %s2801_s15 = sphi %s2828_s15, %s14_s15  }
   0x2   : > { %p172_p1 = scmp.lt.s32.totalorder %s2801_s15, 3 }
   0x4   : > { %p173_p2 = pnand %p2002_p0, %p172_p1 }
   0x5   : > { %v2702_v0 = vld [vmem:[%s3350_s1 + $0x40] sm:$0xff] (!%p173_p2)   ;;  %p203_p3 = scmp.lt.s32.totalorder (!%p173_p2), %s1998_s16, 1  ;;  %v2704_v2 = vld [vmem:[%s3350_s1 + $0x48] sm:$0xff] (!%p173_p2)   ;;  %v2706_v4 = vld [vmem:[%s3350_s1 + $0x50] sm:$0xff] (!%p173_p2)   ;;  %vm661_vm0 = vcmask (!%p173_p2), 1042432   ;;  %vm662_vm3 = vcmask (!%p173_p2), 1046532  }
   0x6   : > { %176 = sbr.rel (%p173_p2) target bundleno = 395 (0x18b), region = 36  ;;  %v2703_v1 = vld [vmem:[%s3350_s1 + $0x140] sm:$0xff] (!%p173_p2)   ;;  %2381 = vmatprep.subr.bf16.mxu1 (!%p173_p2), %v2702_v0  ;;  %v2705_v3 = vld [vmem:[%s3350_s1 + $0x148] sm:$0xff] (!%p173_p2)   ;;  %v2707_v5 = vld [vmem:[%s3350_s1 + $0x150] sm:$0xff] (!%p173_p2)   ;;  %vm255_vm1 = vsmask.f32 (!%p173_p2), 3328 }
   0x7   : > { %2501 = vmatprep.subr.bf16.mxu0 (!%p173_p2), %v2703_v1  ;;  %2382 = vmatpush3.bf16.msra.mxu1 (!%p173_p2), %v2702_v0  ;;  %v2708_v6 = vld [vmem:[%s3350_s1 + $0x58] sm:$0xff] (!%p173_p2)   ;;  %v2710_v8 = vld [vmem:[%s3350_s1 + $0x60] sm:$0xff] (!%p173_p2)   ;;  %v2712_v10 = vld [vmem:[%s3350_s1 + $0x68] sm:$0xff] (!%p173_p2)   ;;  %vm256_vm2 = vsmask.f32 (!%p173_p2), 7440 }
   0x8   : > { %2502 = vmatpush3.bf16.msra.mxu0 (!%p173_p2), %v2703_v1  ;;  %2383 = vmatprep.subr.bf16.mxu1 (!%p173_p2), %v2704_v2  ;;  %v2709_v7 = vld [vmem:[%s3350_s1 + $0x158] sm:$0xff] (!%p173_p2)   ;;  %v2711_v9 = vld [vmem:[%s3350_s1 + $0x160] sm:$0xff] (!%p173_p2)   ;;  %v2713_v11 = vld [vmem:[%s3350_s1 + $0x168] sm:$0xff] (!%p173_p2)  }
   0x9   : > { %2503 = vmatprep.subr.bf16.mxu0 (!%p173_p2), %v2705_v3  ;;  %v2714_v18 = vld [vmem:[%s3350_s1 + $0x70] sm:$0xff] (!%p173_p2)   ;;  %v2716_v33 = vld [vmem:[%s3350_s1 + $0x78] sm:$0xff] (!%p173_p2)   ;;  %vm2918_vm4 = vmor (!%p173_p2), %vm255_vm1, %vm256_vm2 }
   0xa   : > { %v2715_v29 = vld [vmem:[%s3350_s1 + $0x170] sm:$0xff] (!%p173_p2)   ;;  %v2717_v38 = vld [vmem:[%s3350_s1 + $0x178] sm:$0xff] (!%p173_p2)   ;;  %vm2929_vm5 = vmor (!%p173_p2), %vm661_vm0, %vm662_vm3 }
   0xb   : > { %2384 = vmatpush3.bf16.msra.mxu1 (!%p173_p2), %v2704_v2  ;;  %v2718_v55 = vld [vmem:[%s3350_s1] sm:$0xff] (!%p173_p2)   ;;  %v2751_v48 = vld [vmem:[%s3350_s1 + $0x1f0] sm:$0xff] (!%p173_p2)  }
   0xc   : > { %2504 = vmatpush3.bf16.msra.mxu0 (!%p173_p2), %v2705_v3  ;;  %2385 = vmatprep.subr.bf16.mxu1 (!%p173_p2), %v2706_v4  ;;  %v2719_v3 = vld [vmem:[%s3350_s1 + $0x180] sm:$0xff] (!%p173_p2)   ;;  %v2749_v39 = vld [vmem:[%s3350_s1 + $0xb0] sm:$0xff] (!%p173_p2)  }
   0xd   : > { %s3359_s16 = smov (!%p203_p3, %s1998_s16), 1  ;;  %2505 = vmatprep.subr.bf16.mxu0 %v2707_v5 }
   0xe   : > { %s2693_s7 = smul.u32 80, %s3359_s16  ;;  %s2259_s21 = sshll.u32 %s3359_s16, 5 }
   0xf   : > { %2386 = vmatpush3.bf16.msra.mxu1 %v2706_v4  ;;  %s3208_s28 = scalar_lea.vmem %s3351_s2, %s2259_s21  ;;  %s2260_s21 = sshll.u32 %s3359_s16, 6 }
  0x10   : > { %2506 = vmatpush3.bf16.msra.mxu0 %v2707_v5  ;;  %2387 = vmatprep.subr.bf16.mxu1 %v2708_v6  ;;  %s2872_s14 = scalar_lea.vmem %s3349_s0, %s2693_s7  ;;  %s217_s24 = scalar_lea.vmem %s3353_s4, %s2260_s21 }
  0x11   : > { %2507 = vmatprep.subr.bf16.mxu0 %v2709_v7  ;;  %v2881_v12 = vld [vmem:[%s2872_s14] sm:$0xf]  ;;  %v2884_v13 = vld [vmem:[%s2872_s14 + $0x4] sm:$0x1]  ;;  %v2887_v14 = vld [vmem:[%s2872_s14 + $0x8] sm:$0xf] }
  0x12   : > { %v222_v15 = vld [vmem:[%s2872_s14 + $0xc] sm:$0x1]  ;;  %v2891_v16 = vld [vmem:[%s2872_s14 + $0x10] sm:$0xf]  ;;  %v2894_v17 = vld [vmem:[%s2872_s14 + $0x14] sm:$0x1] }
  0x13   : > { %2388 = vmatpush3.bf16.msra.mxu1 %v2708_v6  ;;  %v259_v19 = vshrl.u32 %v2881_v12, 16  ;;  %v262_v20 = vshll.u32 %v2881_v12, 16  ;;  %v268_v21 = vshll.u32 %v2884_v13, 16  ;;  %v273_v22 = vshrl.u32 %v2887_v14, 16  ;;  %v226_v42 = vld [vmem:[%s2872_s14 + $0x1c] sm:$0x1] }
  0x14   : > { %2508 = vmatpush3.bf16.msra.mxu0 %v2709_v7  ;;  %2389 = vmatprep.subr.bf16.mxu1 %v2710_v8  ;;  %v276_v23 = vshll.u32 %v2887_v14, 16  ;;  %v282_v24 = vshll.u32 %v222_v15, 16  ;;  %v287_v27 = vshrl.u32 %v2891_v16, 16  ;;  %v290_v28 = vshll.u32 %v2891_v16, 16  ;;  %v2925_v47 = vld [vmem:[%s2872_s14 + $0x18] sm:$0xf] }
  0x15   : > { %2509 = vmatprep.subr.bf16.mxu0 %v2711_v9  ;;  %v261_v25 = vrot.slane %v259_v19, 4  ;;  %v264_v26 = vrot.slane %v262_v20, 5  ;;  %v270_v30 = vrot.slane %v268_v21, 5  ;;  %v275_v31 = vrot.slane %v273_v22, 4  ;;  %v2942_v58 = vld [vmem:[%s2872_s14 + $0x20] sm:$0xf] }
  0x16   : > { %v278_v32 = vrot.slane %v276_v23, 5  ;;  %v289_v35 = vrot.slane %v287_v27, 4  ;;  %v292_v36 = vrot.slane %v290_v28, 5  ;;  %v296_v37 = vshll.u32 %v2894_v17, 16  ;;  %v228_v63 = vld [vmem:[%s2872_s14 + $0x24] sm:$0x1] }
  0x17   : > { %2390 = vmatpush3.bf16.msra.mxu1 %v2710_v8  ;;  %v265_v34 = vor.u32 %v264_v26, %v261_v25  ;;  %v284_v41 = vrot.slane %v282_v24, 5  ;;  %v2049_v43 = vrot.slane %v2887_v14, 9  ;;  %v310_v50 = vshll.u32 %v226_v42, 16  ;;  %v2721_v24 = vld [vmem:[%s3350_s1 + $0x188] sm:$0xff]  }
  0x18   : > { %2510 = vmatpush3.bf16.msra.mxu0 %v2711_v9  ;;  %2391 = vmatprep.subr.bf16.mxu1 %v2712_v10  ;;  %v279_v40 = vor.u32 %v278_v32, %v275_v31  ;;  %v293_v45 = vor.u32 %v292_v36, %v289_v35  ;;  %v298_v46 = vrot.slane %v296_v37, 5  ;;  %v670_v51 = vrot.slane %v222_v15, 5  ;;  %v2720_v27 = vld [vmem:[%s3350_s1 + $0x8] sm:$0xff]   ;;  %v2723_v31 = vld [vmem:[%s3350_s1 + $0x190] sm:$0xff]  }
  0x19   : > { %2511 = vmatprep.subr.bf16.mxu0 %v2713_v11  ;;  %v266_v44 = vrot.slane %v265_v34, 4  ;;  %v2050_v52 = vrot.slane %v2891_v16, 9  ;;  %v674_v56 = vrot.slane %v2894_v17, 5  ;;  %v2051_v57 = vrot.slane %v2925_v47, 9  ;;  %v2994_v28 = vld [vmem:[%s2872_s14 + $0x28] sm:$0xf] }
  0x1a   : > { %v280_v49 = vrot.slane %v279_v40, 4  ;;  %v294_v54 = vrot.slane %v293_v45, 4  ;;  %v2950_v60 = vsel %vm2929_vm5, %v2049_v43, %v670_v51  ;;  %v678_v61 = vrot.slane %v226_v42, 5  ;;  %v230_v32 = vld [vmem:[%s2872_s14 + $0x2c] sm:$0x1]  ;;  %v2725_v45 = vld [vmem:[%s3350_s1 + $0x198] sm:$0xff]  }
  0x1b   : > { %2392 = vmatpush3.bf16.msra.mxu1 %v2712_v10  ;;  %v271_v53 = vsel %vm2918_vm4, %v266_v44, %v270_v30  ;;  %v301_v62 = vshrl.u32 %v2925_v47, 16  ;;  %v675_v2 = vsel %vm2929_vm5, %v2050_v52, %v674_v56  ;;  %v304_v4 = vshll.u32 %v2925_v47, 16  ;;  %v3013_v44 = vld [vmem:[%s2872_s14 + $0x30] sm:$0xf]  ;;  %v232_v51 = vld [vmem:[%s2872_s14 + $0x34] sm:$0x1] }
  0x1c   : > { %2512 = vmatpush3.bf16.msra.mxu0 %v2713_v11  ;;  %2393 = vmatprep.subr.bf16.mxu1 %v2714_v18  ;;  %v2946_v59 = vsel %vm2918_vm4, %v280_v49, %v284_v41  ;;  %v2956_v0 = vsel %vm2918_vm4, %v294_v54, %v298_v46  ;;  %v679_v6 = vsel %vm2929_vm5, %v2051_v57, %v678_v61  ;;  %v312_v11 = vrot.slane %v310_v50, 5  ;;  %v2722_v41 = vld [vmem:[%s3350_s1 + $0x10] sm:$0xff]  }
  0x1d   : > { %2513 = vmatprep.subr.bf16.mxu0 %v2715_v29  ;;  %v2024_v1 = vcombine.low %v271_v53, %v2946_v59  ;;  %v2128_v5 = vcombine.low %v2946_v59, %v2956_v0  ;;  %v2157_v7 = vcombine.low %v2950_v60, %v675_v2  ;;  %v2970_v8 = vcombine.low %v675_v2, %v679_v6  ;;  %v2783_v59 = vld [vmem:[%s3350_s1 + $0x128] sm:$0xff]  }
  0x1e   : > { %v303_v9 = vrot.slane %v301_v62, 4  ;;  %v306_v10 = vrot.slane %v304_v4, 5  ;;  %v2052_v15 = vrot.slane %v2942_v58, 9  ;;  %v682_v17 = vrot.slane %v228_v63, 5  ;;  %v3027_v62 = vld [vmem:[%s2872_s14 + $0x38] sm:$0xf] }
  0x1f   : > { %2394 = vmatpush3.bf16.msra.mxu1 %v2714_v18  ;;  %2397 = vmatprep.mubr.bf16.mxu1 %v2024_v1  ;;  %v2100_v18 = vcombine.low %v2887_v14, %v2891_v16  ;;  %v2101_v20 = vcombine.low %v2925_v47, %v2942_v58  ;;  %v315_v25 = vshrl.u32 %v2942_v58, 16  ;;  %v324_v34 = vshll.u32 %v228_v63, 16  ;;  %v234_v63 = vld [vmem:[%s2872_s14 + $0x3c] sm:$0x1] }
  0x20   : > { %2514 = vmatpush3.bf16.msra.mxu0 %v2715_v29  ;;  %2395 = vmatprep.subr.bf16.mxu1 %v2716_v33  ;;  %v307_v19 = vor.u32 %v306_v10, %v303_v9  ;;  %v2979_v21 = vsel %vm2929_vm5, %v2052_v15, %v682_v17  ;;  %v318_v29 = vshll.u32 %v2942_v58, 16  ;;  %v329_v35 = vshrl.u32 %v2994_v28, 16  ;;  %v3047_v17 = vld [vmem:[%s2872_s14 + $0x44] sm:$0x1] }
  0x21   : > { %2515 = vmatprep.subr.bf16.mxu0 %v2717_v38  ;;  %2517 = vmatprep.mubr.bf16.mxu0 %v2157_v7  ;;  %v2158_v23 = vcombine.low %v679_v6, %v2979_v21  ;;  %v332_v37 = vshll.u32 %v2994_v28, 16  ;;  %v2053_v40 = vrot.slane %v2994_v28, 9  ;;  %v326_v42 = vrot.slane %v324_v34, 5  ;;  %v3038_v7 = vld [vmem:[%s2872_s14 + $0x40] sm:$0xf] }
  0x22   : > { %v308_v22 = vrot.slane %v307_v19, 4  ;;  %v320_v36 = vrot.slane %v318_v29, 5  ;;  %v331_v43 = vrot.slane %v329_v35, 4  ;;  %v686_v52 = vrot.slane %v230_v32, 5  ;;  %v2724_v19 = vld [vmem:[%s3350_s1 + $0x18] sm:$0xff]  }
  0x23   : > { %2396 = vmatpush3.bf16.msra.mxu1 %v2716_v33  ;;  %v317_v33 = vrot.slane %v315_v25, 4  ;;  %v334_v49 = vrot.slane %v332_v37, 5  ;;  %v2054_v53 = vrot.slane %v3013_v44, 9  ;;  %v690_v54 = vrot.slane %v232_v51, 5 }
  0x24   : > { %2516 = vmatpush3.bf16.msra.mxu0 %v2717_v38  ;;  %2405 = vmatprep.subr.bf16.mxu1 %v2718_v55  ;;  %v2988_v26 = vsel %vm2918_vm4, %v308_v22, %v312_v11  ;;  %v338_v38 = vshll.u32 %v230_v32, 16  ;;  %v3024_v61 = vsel %vm2929_vm5, %v2053_v40, %v686_v52  ;;  %v343_v1 = vshrl.u32 %v3013_v44, 16  ;;  %v2729_v40 = vld [vmem:[%s3350_s1 + $0x1a8] sm:$0xff]  }
  0x25   : > { %2525 = vmatprep.subr.bf16.mxu0 %v2719_v3  ;;  %v2999_v30 = vcombine.low %v2956_v0, %v2988_v26  ;;  %v321_v46 = vor.u32 %v320_v36, %v317_v33  ;;  %v335_v57 = vor.u32 %v334_v49, %v331_v43  ;;  %v3033_v2 = vsel %vm2929_vm5, %v2054_v53, %v690_v54  ;;  %v2788_v0 = vld [vmem:[%s3352_s3 + $0x30] sm:$0xff]  }
  0x26   : > { %v340_v50 = vrot.slane %v338_v38, 5  ;;  %v352_v4 = vshll.u32 %v232_v51, 16  ;;  %v357_v6 = vshrl.u32 %v3027_v62, 16  ;;  %v2159_v11 = vcombine.low %v3024_v61, %v3033_v2  ;;  %v2726_v38 = vld [vmem:[%s3350_s1 + $0x20] sm:$0xff]  }
  0x27   : > { %2518 = vmatmul.mubr.bf16.vlgmr.msra.gmra.mrb[0].mxu0 %v2158_v23  ;;  %2398 = vmatmul.mubr.bf16.vlgmr.msra.gmra.mrb[0].mxu1 %v2999_v30  ;;  %v322_v56 = vrot.slane %v321_v46, 4  ;;  %v336_v10 = vrot.slane %v335_v57, 4  ;;  %v345_v15 = vrot.slane %v343_v1, 4  ;;  %v366_v32 = vshll.u32 %v234_v63, 16  ;;  %v2728_v57 = vld [vmem:[%s3350_s1 + $0x28] sm:$0xff]  }
  0x28   : > { %2526 = vmatpush3.bf16.msra.mxu0 %v2719_v3  ;;  %2406 = vmatpush3.bf16.msra.mxu1 %v2718_v55  ;;  %v2102_v55 = vcombine.low %v2994_v28, %v3013_v44  ;;  %v346_v3 = vshll.u32 %v3013_v44, 16  ;;  %v359_v25 = vrot.slane %v357_v6, 4  ;;  %v2055_v33 = vrot.slane %v3027_v62, 9 }
  0x29   : > { %2527 = vmatprep.subr.bf16.mxu0 %v2721_v24  ;;  %2407 = vmatprep.subr.bf16.mxu1 %v2720_v27  ;;  %v3042_v9 = vsel %vm2918_vm4, %v322_v56, %v326_v42  ;;  %v3059_v29 = vsel %vm2918_vm4, %v336_v10, %v340_v50  ;;  %v694_v36 = vrot.slane %v234_v63, 5  ;;  %v2140_v37 = vrot.slane %v3038_v7, 9 }
  0x2a   : > { %v2129_v22 = vcombine.low %v2988_v26, %v3042_v9  ;;  %v348_v23 = vrot.slane %v346_v3, 5  ;;  %2521 = vmatprep.mubr.bf16.mxu0 %v2159_v11  ;;  %v3065_v34 = vcombine.low %v3042_v9, %v3059_v29  ;;  %v1162_v43 = vrot.slane %v3047_v17, 5  ;;  %v2731_v3 = vld [vmem:[%s3350_s1 + $0x1b0] sm:$0xff]  }
  0x2b   : > { %v368_v49 = vrot.slane %v366_v32, 5  ;;  %v3077_v50 = vsel %vm2929_vm5, %v2055_v33, %v694_v36  ;;  %v2037_v54 = vcombine.low %v2891_v16, %v2925_v47  ;;  %v999_v56 = vshrl.u32 %v3038_v7, 16  ;;  %v2732_v32 = vld [vmem:[%s3350_s1 + $0x38] sm:$0xff]   ;;  %v2737_v33 = vld [vmem:[%s3350_s1 + $0x1c0] sm:$0xff]   ;;  %v2767_v16 = vld [vmem:[%s3350_s1 + $0xf0] sm:$0xff]  }
  0x2c   : > { %2528 = vmatpush3.bf16.msra.mxu0 %v2721_v24  ;;  %2408 = vmatpush3.bf16.msra.mxu1 %v2720_v27  ;;  %v354_v24 = vrot.slane %v352_v4, 5  ;;  %v2727_v27 = vld [vmem:[%s3350_s1 + $0x1a0] sm:$0xff]   ;;  %v349_v35 = vor.u32 %v348_v23, %v345_v15  ;;  %v3084_v52 = vsel %vm2929_vm5, %v2140_v37, %v1162_v43  ;;  %v1002_v10 = vshll.u32 %v3038_v7, 16  ;;  %v237_v43 = vld [vmem:[%s2872_s14 + $0x48] sm:$0xf]  ;;  %v2779_v47 = vld [vmem:[%s3350_s1 + $0x118] sm:$0xff]  }
  0x2d   : > { %2529 = vmatprep.subr.bf16.mxu0 %v2723_v31  ;;  %2409 = vmatprep.subr.bf16.mxu1 %v2722_v41  ;;  %v2160_v53 = vcombine.low %v3077_v50, %v3084_v52  ;;  %v1001_v6 = vrot.slane %v999_v56, 4  ;;  %v2036_v15 = vcombine.low %v2881_v12, %v2887_v14  ;;  %v2735_v37 = vld [vmem:[%s3350_s1 + $0x80] sm:$0xff]   ;;  %v2739_v56 = vld [vmem:[%s3350_s1 + $0x88] sm:$0xff]   ;;  %v2768_v14 = vld [vmem:[%s3350_s1 + $0x230] sm:$0xff]  }
  0x2e   : > { %v350_v46 = vrot.slane %v349_v35, 4  ;;  %2401 = vmatprep.mubr.bf16.mxu1 %v3065_v34  ;;  %v1004_v23 = vrot.slane %v1002_v10, 5 }
  0x2f   : > { %2522 = vmatmul.mubr.bf16.gmra.mrb[4].mxu0 %v2160_v53  ;;  %v666_v53 = vrot.slane %v2884_v13, 5 }
  0x30   : > { %2530 = vmatpush3.bf16.msra.mxu0 %v2723_v31  ;;  %v360_v31 = vshll.u32 %v3027_v62, 16  ;;  %2410 = vmatpush3.bf16.msra.mxu1 %v2722_v41  ;;  %v2103_v41 = vcombine.low %v3027_v62, %v3038_v7 }
  0x31   : > { %2531 = vmatprep.subr.bf16.mxu0 %v2725_v45  ;;  %2411 = vmatprep.subr.bf16.mxu1 %v2724_v19 }
  0x32   : > { %v362_v42 = vrot.slane %v360_v31, 5  ;;  %2541 = vmatprep.mubr.bf16.mxu0 %v2037_v54 }
  0x34   : > { %2532 = vmatpush3.bf16.msra.mxu0 %v2725_v45  ;;  %v363_v51 = vor.u32 %v362_v42, %v359_v25  ;;  %v3088_v45 = vsel %vm2918_vm4, %v350_v46, %v354_v24  ;;  %2412 = vmatpush3.bf16.msra.mxu1 %v2724_v19  ;;  %v1008_v19 = vshll.u32 %v3047_v17, 16  ;;  %v2730_v24 = vld [vmem:[%s3350_s1 + $0x30] sm:$0xff]   ;;  %v2733_v25 = vld [vmem:[%s3350_s1 + $0x1b8] sm:$0xff]   ;;  %v2039_v42 = vcombine.low %v3013_v44, %v3027_v62  ;;  %v2792_v62 = vld [vmem:[%s3208_s28 + $0x8] sm:$0xff]  }
  0x35   : > { %2533 = vmatprep.subr.bf16.mxu0 %v2727_v27  ;;  %v2130_v1 = vcombine.low %v3059_v29, %v3088_v45  ;;  %2413 = vmatprep.subr.bf16.mxu1 %v2726_v38  ;;  %v1454_v46 = vshrl.u32 %v237_v43, 16  ;;  %v2790_v44 = vld [vmem:[%s3352_s3 + $0x38] sm:$0xff]  }
  0x36   : > { %v364_v63 = vrot.slane %v363_v51, 4  ;;  %v1010_v31 = vrot.slane %v1008_v19, 5  ;;  %v2048_v51 = vrot.slane %v2881_v12, 9  ;;  %v2185_v12 = vcombine.low %v3038_v7, %v237_v43  ;;  %v2743_v19 = vld [vmem:[%s3350_s1 + $0x98] sm:$0xff]   ;;  %v2793_v7 = vld [vmem:[%s3208_s28 + $0x10] sm:$0xff]  }
  0x38   : > { %2534 = vmatpush3.bf16.msra.mxu0 %v2727_v27  ;;  %v3105_v4 = vsel %vm2918_vm4, %v364_v63, %v368_v49  ;;  %2414 = vmatpush3.bf16.msra.mxu1 %v2726_v38  ;;  %v1005_v27 = vor.u32 %v1004_v23, %v1001_v6  ;;  %v2038_v38 = vcombine.low %v2942_v58, %v2994_v28  ;;  %v1457_v49 = vshll.u32 %v237_v43, 16  ;;  %v2741_v6 = vld [vmem:[%s3350_s1 + $0x90] sm:$0xff]   ;;  %v2746_v23 = vld [vmem:[%s3350_s1 + $0x1e0] sm:$0xff]   ;;  %v2784_v28 = vld [vmem:[%s3352_s3 + $0x28] sm:$0xff]  }
  0x39   : > { %2535 = vmatprep.subr.bf16.mxu0 %v2729_v40  ;;  %v3110_v11 = vcombine.low %v3088_v45, %v3105_v4  ;;  %2415 = vmatprep.subr.bf16.mxu1 %v2728_v57  ;;  %v1456_v63 = vrot.slane %v1454_v46, 4  ;;  %v667_v13 = vsel %vm2929_vm5, %v2048_v51, %v666_v53  ;;  %v2753_v46 = vld [vmem:[%s3350_s1 + $0xb8] sm:$0xff]   ;;  %v2755_v51 = vld [vmem:[%s3350_s1 + $0xc0] sm:$0xff]   ;;  %v2758_v53 = vld [vmem:[%s3350_s1 + $0x208] sm:$0xff]  }
  0x3a   : > { %v1006_v17 = vrot.slane %v1005_v27, 4  ;;  %v2782_v58 = vld [vmem:[%s3352_s3 + $0x20] sm:$0xff]  }
  0x3b   : > { %2402 = vmatmul.mubr.bf16.gmra.mrb[4].mxu1 %v3110_v11 }
  0x3c   : > { %2536 = vmatpush3.bf16.msra.mxu0 %v2729_v40  ;;  %2421 = vmatprep.mubr.bf16.mxu1 %v2036_v15  ;;  %v3130_v35 = vsel %vm2918_vm4, %v1006_v17, %v1010_v31  ;;  %v2740_v40 = vld [vmem:[%s3350_s1 + $0x1c8] sm:$0xff]   ;;  %v2072_v15 = vcombine.low %v667_v13, %v2950_v60  ;;  %v2745_v17 = vld [vmem:[%s3350_s1 + $0xa0] sm:$0xff]  }
  0x3d   : > { %2537 = vmatprep.subr.bf16.mxu0 %v2731_v3  ;;  %2416 = vmatpush3.bf16.msra.mxu1 %v2728_v57  ;;  %v2131_v36 = vcombine.low %v3105_v4, %v3130_v35  ;;  %v2742_v57 = vld [vmem:[%s3350_s1 + $0x1d0] sm:$0xff]   ;;  %v2773_v13 = vld [vmem:[%s3352_s3] sm:$0xff]  }
  0x3e   : > { %2417 = vmatprep.subr.bf16.mxu1 %v2730_v24 }
  0x40   : > { %2538 = vmatpush3.bf16.msra.mxu0 %v2731_v3  ;;  %v1459_v3 = vrot.slane %v1457_v49, 5  ;;  %v2756_v49 = vld [vmem:[%s3350_s1 + $0x200] sm:$0xff]  }
  0x41   : > { %2539 = vmatprep.subr.bf16.mxu0 %v2733_v25  ;;  %2418 = vmatpush3.bf16.msra.mxu1 %v2730_v24  ;;  %v238_v24 = vld [vmem:[%s2872_s14 + $0x4c] sm:$0x1] }
  0x42   : > { %2419 = vmatprep.subr.bf16.mxu1 %v2732_v32  ;;  %v1460_v10 = vor.u32 %v1459_v3, %v1456_v63  ;;  %v1463_v60 = vshll.u32 %v238_v24, 16  ;;  %v1611_v31 = vrot.slane %v238_v24, 5  ;;  %v2760_v63 = vld [vmem:[%s3350_s1 + $0x210] sm:$0xff]   ;;  %v2764_v3 = vld [vmem:[%s3350_s1 + $0x220] sm:$0xff]  }
  0x43   : > { %v2791_v24 = vld [vmem:[%s3208_s28] sm:$0xff]  }
  0x44   : > { %2540 = vmatpush3.bf16.msra.mxu0 %v2733_v25  ;;  %v2219_v25 = vrot.slane %v237_v43, 9  ;;  %v1461_v27 = vrot.slane %v1460_v10, 4  ;;  %v2754_v43 = vld [vmem:[%s3350_s1 + $0x1f8] sm:$0xff]   ;;  %v2775_v10 = vld [vmem:[%s3350_s1 + $0x108] sm:$0xff]  }
  0x45   : > { %2549 = vmatprep.subr.bf16.mxu0 %v2737_v33  ;;  %2420 = vmatpush3.bf16.msra.mxu1 %v2732_v32  ;;  %v1465_v32 = vrot.slane %v1463_v60, 5 }
  0x46   : > { %2429 = vmatprep.subr.bf16.mxu1 %v2735_v37 }
  0x47   : > { %2542 = vmatmul.mubr.bf16.vlgmr.msra.gmra.mrb[0].mxu0 %v2038_v38 }
  0x48   : > { %2550 = vmatpush3.bf16.msra.mxu0 %v2737_v33  ;;  %2545 = vmatprep.mubr.bf16.mxu0 %v2039_v42  ;;  %v3179_v33 = vsel %vm2929_vm5, %v2219_v25, %v1611_v31 }
  0x49   : > { %2551 = vmatprep.subr.bf16.mxu0 %v2740_v40  ;;  %2422 = vmatmul.mubr.bf16.vlgmr.msra.gmra.mrb[0].mxu1 %v2037_v54  ;;  %v2744_v54 = vld [vmem:[%s3350_s1 + $0x1d8] sm:$0xff]  }
  0x4a   : > { %2430 = vmatpush3.bf16.msra.mxu1 %v2735_v37  ;;  %2425 = vmatprep.mubr.bf16.mxu1 %v2038_v38  ;;  %v1466_v37 = vsel %vm2918_vm4, %v1461_v27, %v1465_v32  ;;  %v2236_v38 = vcombine.low %v3084_v52, %v3179_v33 }
  0x4b   : > { %2431 = vmatprep.subr.bf16.mxu1 %v2739_v56 }
  0x4c   : > { %2552 = vmatpush3.bf16.msra.mxu0 %v2740_v40  ;;  %v2210_v40 = vcombine.low %v3130_v35, %v1466_v37 }
  0x4d   : > { %2553 = vmatprep.subr.bf16.mxu0 %v2742_v57 }
  0x4e   : > { %2432 = vmatpush3.bf16.msra.mxu1 %v2739_v56  ;;  %v2074_v56 = vcombine.low %v2979_v21, %v3024_v61  ;;  %v2759_v21 = vld [vmem:[%s3350_s1 + $0xd0] sm:$0xff]   ;;  %v2762_v61 = vld [vmem:[%s3350_s1 + $0x218] sm:$0xff]  }
  0x4f   : > { %2546 = vmatmul.mubr.bf16.gmra.mrb[4].mxu0 %v2185_v12  ;;  %2433 = vmatprep.subr.bf16.mxu1 %v2741_v6  ;;  %v2769_v12 = vld [vmem:[%s3350_s1 + $0xf8] sm:$0xff]  }
  0x50   : > { %2554 = vmatpush3.bf16.msra.mxu0 %v2742_v57  ;;  %2565 = vmatprep.mubr.bf16.mxu0 %v2999_v30  ;;  %v2748_v30 = vld [vmem:[%s3350_s1 + $0x1e8] sm:$0xff]  }
  0x51   : > { %2555 = vmatprep.subr.bf16.mxu0 %v2744_v54  ;;  %2426 = vmatmul.mubr.bf16.gmra.mrb[4].mxu1 %v2039_v42  ;;  %v2747_v42 = vld [vmem:[%s3350_s1 + $0xa8] sm:$0xff]  }
  0x52   : > { %2434 = vmatpush3.bf16.msra.mxu1 %v2741_v6  ;;  %2445 = vmatprep.mubr.bf16.mxu1 %v2072_v15  ;;  %v2757_v57 = vld [vmem:[%s3350_s1 + $0xc8] sm:$0xff]   ;;  %v2772_v6 = vld [vmem:[%s3350_s1 + $0x100] sm:$0xff]   ;;  %v2778_v15 = vld [vmem:[%s3352_s3 + $0x10] sm:$0xff]  }
  0x53   : > { %2435 = vmatprep.subr.bf16.mxu1 %v2743_v19 }
  0x54   : > { %2556 = vmatpush3.bf16.msra.mxu0 %v2744_v54  ;;  %v2776_v54 = vld [vmem:[%s3352_s3 + $0x8] sm:$0xff]  }
  0x55   : > { %2557 = vmatprep.subr.bf16.mxu0 %v2746_v23 }
  0x56   : > { %2436 = vmatpush3.bf16.msra.mxu1 %v2743_v19  ;;  %v2777_v19 = vld [vmem:[%s3350_s1 + $0x110] sm:$0xff]  }
  0x57   : > { %2437 = vmatprep.subr.bf16.mxu1 %v2745_v17 }
  0x58   : > { %2558 = vmatpush3.bf16.msra.mxu0 %v2746_v23  ;;  %v2780_v23 = vld [vmem:[%s3352_s3 + $0x18] sm:$0xff]  }
  0x59   : > { %2559 = vmatprep.subr.bf16.mxu0 %v2748_v30 }
  0x5a   : > { %2438 = vmatpush3.bf16.msra.mxu1 %v2745_v17 }
  0x5b   : > { %2439 = vmatprep.subr.bf16.mxu1 %v2747_v42 }
  0x5c   : > { %2560 = vmatpush3.bf16.msra.mxu0 %v2748_v30 }
  0x5d   : > { %2561 = vmatprep.subr.bf16.mxu0 %v2751_v48 }
  0x5e   : > { %2440 = vmatpush3.bf16.msra.mxu1 %v2747_v42 }
  0x5f   : > { %2441 = vmatprep.subr.bf16.mxu1 %v2749_v39 }
  0x60   : > { %2562 = vmatpush3.bf16.msra.mxu0 %v2751_v48 }
  0x61   : > { %2563 = vmatprep.subr.bf16.mxu0 %v2754_v43 }
  0x62   : > { %2442 = vmatpush3.bf16.msra.mxu1 %v2749_v39 }
  0x63   : > { %2443 = vmatprep.subr.bf16.mxu1 %v2753_v46 }
  0x64   : > { %2564 = vmatpush3.bf16.msra.mxu0 %v2754_v43 }
  0x65   : > { %2573 = vmatprep.subr.bf16.mxu0 %v2756_v49 }
  0x66   : > { %2444 = vmatpush3.bf16.msra.mxu1 %v2753_v46 }
  0x67   : > { %2566 = vmatmul.mubr.bf16.vlgmr.msra.gmra.mrb[0].mxu0 %v3065_v34  ;;  %2453 = vmatprep.subr.bf16.mxu1 %v2755_v51  ;;  %v2075_v34 = vcombine.low %v3033_v2, %v3077_v50  ;;  %v2763_v2 = vld [vmem:[%s3350_s1 + $0xe0] sm:$0xff]   ;;  %v2766_v50 = vld [vmem:[%s3350_s1 + $0x228] sm:$0xff]  }
  0x68   : > { %2574 = vmatpush3.bf16.msra.mxu0 %v2756_v49  ;;  %2569 = vmatprep.mubr.bf16.mxu0 %v3110_v11  ;;  %v2761_v11 = vld [vmem:[%s3350_s1 + $0xd8] sm:$0xff]  }
  0x69   : > { %2575 = vmatprep.subr.bf16.mxu0 %v2758_v53  ;;  %2446 = vmatmul.mubr.bf16.vlgmr.msra.gmra.mrb[0].mxu1 %v2970_v8 }
  0x6a   : > { %2454 = vmatpush3.bf16.msra.mxu1 %v2755_v51  ;;  %2449 = vmatprep.mubr.bf16.mxu1 %v2074_v56 }
  0x6b   : > { %2455 = vmatprep.subr.bf16.mxu1 %v2757_v57 }
  0x6c   : > { %2576 = vmatpush3.bf16.msra.mxu0 %v2758_v53 }
  0x6d   : > { %2577 = vmatprep.subr.bf16.mxu0 %v2760_v63 }
  0x6e   : > { %2456 = vmatpush3.bf16.msra.mxu1 %v2757_v57 }
  0x6f   : > { %2570 = vmatmul.mubr.bf16.gmra.mrb[4].mxu0 %v2210_v40  ;;  %2457 = vmatprep.subr.bf16.mxu1 %v2759_v21 }
  0x70   : > { %2578 = vmatpush3.bf16.msra.mxu0 %v2760_v63  ;;  %2589 = vmatprep.mubr.bf16.mxu0 %v2970_v8  ;;  %v2765_v8 = vld [vmem:[%s3350_s1 + $0xe8] sm:$0xff]  }
  0x71   : > { %2579 = vmatprep.subr.bf16.mxu0 %v2762_v61  ;;  %2450 = vmatmul.mubr.bf16.gmra.mrb[4].mxu1 %v2075_v34 }
  0x72   : > { %2458 = vmatpush3.bf16.msra.mxu1 %v2759_v21  ;;  %2469 = vmatprep.mubr.bf16.mxu1 %v2100_v18  ;;  %v2770_v18 = vld [vmem:[%s3350_s1 + $0x238] sm:$0xff]  }
  0x73   : > { %2459 = vmatprep.subr.bf16.mxu1 %v2761_v11 }
  0x74   : > { %2580 = vmatpush3.bf16.msra.mxu0 %v2762_v61 }
  0x75   : > { %2581 = vmatprep.subr.bf16.mxu0 %v2764_v3 }
  0x76   : > { %2460 = vmatpush3.bf16.msra.mxu1 %v2761_v11 }
  0x77   : > { %2461 = vmatprep.subr.bf16.mxu1 %v2763_v2 }
  0x78   : > { %2582 = vmatpush3.bf16.msra.mxu0 %v2764_v3 }
  0x79   : > { %2583 = vmatprep.subr.bf16.mxu0 %v2766_v50 }
  0x7a   : > { %2462 = vmatpush3.bf16.msra.mxu1 %v2763_v2 }
  0x7b   : > { %2463 = vmatprep.subr.bf16.mxu1 %v2765_v8 }
  0x7c   : > { %2584 = vmatpush3.bf16.msra.mxu0 %v2766_v50 }
  0x7d   : > { %2585 = vmatprep.subr.bf16.mxu0 %v2768_v14 }
  0x7e   : > { %2464 = vmatpush3.bf16.msra.mxu1 %v2765_v8 }
  0x7f   : > { %2465 = vmatprep.subr.bf16.mxu1 %v2767_v16 }
  0x80   : > { %2586 = vmatpush3.bf16.msra.mxu0 %v2768_v14 }
  0x81   : > { %2587 = vmatprep.subr.bf16.mxu0 %v2770_v18 }
  0x82   : > { %2466 = vmatpush3.bf16.msra.mxu1 %v2767_v16 }
  0x83   : > { %2467 = vmatprep.subr.bf16.mxu1 %v2769_v12 }
  0x84   : > { %2588 = vmatpush3.bf16.msra.mxu0 %v2770_v18 }
  0x85   : > { %2597 = vmatprep.subr.bf16.mxu0 %v2773_v13 }
  0x86   : > { %2468 = vmatpush3.bf16.msra.mxu1 %v2769_v12 }
  0x87   : > { %2590 = vmatmul.mubr.bf16.vlgmr.msra.gmra.mrb[0].mxu0 %v2074_v56  ;;  %2477 = vmatprep.subr.bf16.mxu1 %v2772_v6 }
  0x88   : > { %2598 = vmatpush3.bf16.msra.mxu0 %v2773_v13  ;;  %2593 = vmatprep.mubr.bf16.mxu0 %v2075_v34 }
  0x89   : > { %2599 = vmatprep.subr.bf16.mxu0 %v2776_v54  ;;  %2470 = vmatmul.mubr.bf16.vlgmr.msra.gmra.mrb[0].mxu1 %v2101_v20  ;;  %v2781_v20 = vld [vmem:[%s3350_s1 + $0x120] sm:$0xff]  }
  0x8a   : > { %2478 = vmatpush3.bf16.msra.mxu1 %v2772_v6  ;;  %2473 = vmatprep.mubr.bf16.mxu1 %v2102_v55  ;;  %v2789_v55 = vld [vmem:[%s3350_s1 + $0x138] sm:$0xff]  }
  0x8b   : > { %2479 = vmatprep.subr.bf16.mxu1 %v2775_v10 }
  0x8c   : > { %2600 = vmatpush3.bf16.msra.mxu0 %v2776_v54 }
  0x8d   : > { %2601 = vmatprep.subr.bf16.mxu0 %v2778_v15 }
  0x8e   : > { %2480 = vmatpush3.bf16.msra.mxu1 %v2775_v10 }
  0x8f   : > { %2594 = vmatmul.mubr.bf16.gmra.mrb[4].mxu0 %v2236_v38  ;;  %2481 = vmatprep.subr.bf16.mxu1 %v2777_v19 }
  0x90   : > { %2602 = vmatpush3.bf16.msra.mxu0 %v2778_v15  ;;  %2613 = vmatprep.mubr.bf16.mxu0 %v2791_v24 }
  0x91   : > { %2603 = vmatprep.subr.bf16.mxu0 %v2780_v23  ;;  %2474 = vmatmul.mubr.bf16.gmra.mrb[4].mxu1 %v2103_v41  ;;  %v2794_v41 = vld [vmem:[%s3208_s28 + $0x18] sm:$0xff]  }
  0x92   : > { %2482 = vmatpush3.bf16.msra.mxu1 %v2777_v19  ;;  %2493 = vmatprep.mubr.bf16.mxu1 %v2128_v5  ;;  %v2787_v5 = vld [vmem:[%s3350_s1 + $0x130] sm:$0xff]  }
  0x93   : > { %2483 = vmatprep.subr.bf16.mxu1 %v2779_v47 }
  0x94   : > { %2604 = vmatpush3.bf16.msra.mxu0 %v2780_v23 }
  0x95   : > { %2605 = vmatprep.subr.bf16.mxu0 %v2782_v58 }
  0x96   : > { %2484 = vmatpush3.bf16.msra.mxu1 %v2779_v47 }
  0x97   : > { %2485 = vmatprep.subr.bf16.mxu1 %v2781_v20 }
  0x98   : > { %2606 = vmatpush3.bf16.msra.mxu0 %v2782_v58 }
  0x99   : > { %2607 = vmatprep.subr.bf16.mxu0 %v2784_v28 }
  0x9a   : > { %2486 = vmatpush3.bf16.msra.mxu1 %v2781_v20 }
  0x9b   : > { %2487 = vmatprep.subr.bf16.mxu1 %v2783_v59 }
  0x9c   : > { %2608 = vmatpush3.bf16.msra.mxu0 %v2784_v28 }
  0x9d   : > { %2609 = vmatprep.subr.bf16.mxu0 %v2788_v0 }
  0x9e   : > { %2488 = vmatpush3.bf16.msra.mxu1 %v2783_v59 }
  0x9f   : > { %2489 = vmatprep.subr.bf16.mxu1 %v2787_v5 }
  0xa0   : > { %2610 = vmatpush3.bf16.msra.mxu0 %v2788_v0 }
  0xa1   : > { %2611 = vmatprep.subr.bf16.mxu0 %v2790_v44 }
  0xa2   : > { %2490 = vmatpush3.bf16.msra.mxu1 %v2787_v5 }
  0xa3   : > { %2491 = vmatprep.subr.bf16.mxu1 %v2789_v55 }
  0xa4   : > { %2612 = vmatpush3.bf16.msra.mxu0 %v2790_v44 }
  0xa6   : > { %2492 = vmatpush3.bf16.msra.mxu1 %v2789_v55 }
  0xa7   : > { %2614 = vmatmul.mubr.bf16.vlgmr.msra.gmra.mrb[0].mxu0 %v2792_v62 }
  0xa8   : > { %2617 = vmatprep.mubr.bf16.mxu0 %v2793_v7 }
  0xa9   : > { %2494 = vmatmul.mubr.bf16.vlgmr.msra.gmra.mrb[0].mxu1 %v2129_v22 }
  0xaa   : > { %2497 = vmatprep.mubr.bf16.mxu1 %v2130_v1 }
  0xaf   : > { %2618 = vmatmul.mubr.bf16.gmra.mrb[4].mxu0 %v2794_v41 }
  0xb1   : > { %2498 = vmatmul.mubr.bf16.gmra.mrb[4].mxu1 %v2131_v36 }
 0x17a   : > { %v2615_v52 = vpop.f32.mrb[0].mxu0 }
 0x17b   : > { %v1884_v25 = vpop.f32.mrb[1].mxu0 }
 0x17c   : > { %v2616_v27 = vpop.f32.mrb[2].mxu0  ;;  %v2495_v60 = vpop.f32.mrb[0].mxu1 }
 0x17d   : > { %v1887_v26 = vpop.f32.mrb[3].mxu0  ;;  %v2621_v9 = vadd.f32 %v2615_v52, %v2495_v60  ;;  %v1120_v22 = vpop.f32.mrb[1].mxu1 }
 0x17e   : > { %v2622_v29 = vadd.f32 %v1884_v25, %v1120_v22  ;;  %v2496_v45 = vpop.f32.mrb[2].mxu1 }
 0x17f   : > { %1925 = vst [vmem:[%s217_s24 + $0x10] sm:$0xff] %v2621_v9  ;;  %v2623_v1 = vadd.f32 %v2616_v27, %v2496_v45  ;;  %v1123_v31 = vpop.f32.mrb[3].mxu1 }
 0x180   : > { %1923 = vst [vmem:[%s217_s24] sm:$0xff] %v2622_v29  ;;  %v2624_v4 = vadd.f32 %v1887_v26, %v1123_v31 }
 0x181   : > { %1926 = vst [vmem:[%s217_s24 + $0x18] sm:$0xff] %v2623_v1 }
 0x182   : > { %v2619_v35 = vpop.f32.mrb[4].mxu0  ;;  %1924 = vst [vmem:[%s217_s24 + $0x8] sm:$0xff] %v2624_v4 }
 0x183   : > { %v1900_v36 = vpop.f32.mrb[5].mxu0 }
 0x184   : > { %v2620_v17 = vpop.f32.mrb[6].mxu0  ;;  %v2499_v32 = vpop.f32.mrb[4].mxu1 }
 0x185   : > { %v1903_v30 = vpop.f32.mrb[7].mxu0  ;;  %v2625_v33 = vadd.f32 %v2619_v35, %v2499_v32  ;;  %v1136_v37 = vpop.f32.mrb[5].mxu1 }
 0x186   : > { %v2626_v38 = vadd.f32 %v1900_v36, %v1136_v37  ;;  %v2500_v40 = vpop.f32.mrb[6].mxu1 }
 0x187   : > { %1929 = vst [vmem:[%s217_s24 + $0x30] sm:$0xff] %v2625_v33  ;;  %v2627_v42 = vadd.f32 %v2620_v17, %v2500_v40  ;;  %v1139_v48 = vpop.f32.mrb[7].mxu1 }
 0x188   : > { %1927 = vst [vmem:[%s217_s24 + $0x20] sm:$0xff] %v2626_v38  ;;  %v2628_v39 = vadd.f32 %v1903_v30, %v1139_v48 }
 0x189   : > { %1930 = vst [vmem:[%s217_s24 + $0x38] sm:$0xff] %v2627_v42 }
 0x18a   : > { %1928 = vst [vmem:[%s217_s24 + $0x28] sm:$0xff] %v2628_v39 }
 0x18b PF: > { %s14_s15 = sadd.s32 1, %s2801_s15  }
 0x18c   : > { %p11_p4 = scmp.ge.s32.totalorder %s14_s15, 4  }
 0x18e   :  { %13 = sbr.rel (!%p11_p4) target bundleno = 1 (0x1), region = 77 }

</bundles_post_ra>
